<compile_context>
chip_gen: v7x
topology: tpu7x:2x2x1
jax: 0.10.0
libtpu: 0.0.40
codegen_flags: <defaults>
</compile_context>

<pallas_src>
import functools

import jax
import jax.numpy as jnp
from jax import lax
from jax.experimental import pallas as pl
from jax.experimental.pallas import tpu as pltpu


def _round_up(x, m):
    return (x + m - 1) // m * m


def _pick_vmem_limit():
    """Scoped VMEM limit: ~3/4 of physical, capped at 96 MiB (v7x has 64 MiB)."""
    try:
        cap = pltpu.get_tpu_info().vmem_capacity_bytes
    except Exception:
        cap = 64 * 1024 * 1024
    return int(min(96 * 1024 * 1024, cap * 3 // 4))


def _conv_stats_kernel(x_ref, w_ref, y_ref, stat_ref, *, taps, img_w, hpw, hw, hwp):
    """One image: KH*KW-tap direct conv on the MXU + per-channel sum/sumsq.

    x_ref:    (1, R, Cin)         kw-shifted, zero-padded image rows
                                  (row = kw*hpw + h_pad*W + w, plus zero tail)
    w_ref:    (KH*KW, Cin, Cout8) per-tap weights
    y_ref:    (1, Cout8, HWp)     conv output, channel-major (lane-dense), bf16
    stat_ref: (1, 2, Cout8)       row 0 = per-channel sum, row 1 = sum of squares
    """
    cout8 = w_ref.shape[-1]
    acc = jnp.zeros((hwp, cout8), jnp.float32)
    for t, (kh, kw) in enumerate(taps):
        start = kw * hpw + kh * img_w                 # static Python int
        xs = x_ref[0, pl.ds(start, hwp), :]           # (HWp, Cin) sublane slice
        acc = acc + jnp.dot(xs, w_ref[t], preferred_element_type=jnp.float32)

    # BN statistics from the fp32 accumulator (single data traversal).
    if hwp != hw:
        # Mask the (<8) alignment rows; only needed when H*W % 8 != 0.
        ridx = lax.broadcasted_iota(jnp.int32, acc.shape, 0)
        acc_valid = jnp.where(ridx < hw, acc, 0.0)
    else:
        acc_valid = acc
    s = jnp.sum(acc_valid, axis=0, keepdims=True)                  # (1, Cout8)
    ss = jnp.sum(acc_valid * acc_valid, axis=0, keepdims=True)     # (1, Cout8)
    stat_ref[0] = jnp.concatenate([s, ss], axis=0)                 # (2, Cout8)

    # Channel-major store (XLU transpose): makes the intermediate and the final
    # output lane-dense and NCHW-native (no wrapper transpose afterwards).
    y_ref[0] = jnp.transpose(acc).astype(y_ref.dtype)


def _bn_act_kernel(y_ref, scale_ref, shift_ref, o_ref, *, neg_slope):
    """Streaming folded-BatchNorm affine + LeakyReLU (pure VPU, mem-bound)."""
    y = y_ref[...].astype(jnp.float32) * scale_ref[...] + shift_ref[...]
    o_ref[...] = jnp.where(y >= 0.0, y, neg_slope * y).astype(o_ref.dtype)


def conv_block_forward(x_nchw, w_oihw, gamma, beta, *, eps=0.8, neg_slope=0.2,
                       compute_dtype=jnp.bfloat16, out_dtype=None):
    """ConvBlock forward. x_nchw: (N, Cin, H, W). Returns (N, Cout, H, W).

    out_dtype defaults to x.dtype (f32) for PyTorch parity; pass jnp.bfloat16
    if the consumer accepts it (halves the pass-2 writeback).
    """
    N, Cin, H, W = x_nchw.shape
    Cout, Cin_w, KH, KW = w_oihw.shape
    assert Cin == Cin_w and KH == KW and KH in (1, 3)
    pad = (KH - 1) // 2                       # kernel_size=3 -> 1, kernel_size=1 -> 0
    out_dtype = x_nchw.dtype if out_dtype is None else out_dtype

    HW = H * W
    HWp = _round_up(HW, 8)                    # sublane-aligned accumulator rows
    row_pad = HWp - HW                        # <= 7
    HPW = (H + 2 * pad) * W                   # rows per kw-shifted copy of one image
    Cout8 = _round_up(Cout, 8)
    taps = tuple((kh, kw) for kh in range(KH) for kw in range(KW))
    conv_dtype = jnp.bfloat16 if compute_dtype == jnp.bfloat16 else jnp.float32

    # ---- wrapper glue -------------------------------------------------------
    # NCHW -> NHWC, zero-pad spatially, build KW column-shifted copies so each
    # tap in-kernel is a contiguous row slice (only ~3x input materialized
    # instead of the 9x im2col patch matrix).
    x_nhwc = jnp.transpose(x_nchw, (0, 2, 3, 1)).astype(compute_dtype)
    xp = jnp.pad(x_nhwc, ((0, 0), (pad, pad), (pad, pad), (0, 0)))
    xk = jnp.stack([xp[:, :, kw:kw + W, :] for kw in range(KW)], axis=1)
    xk = xk.reshape(N, KW * HPW, Cin)
    if row_pad:
        xk = jnp.pad(xk, ((0, 0), (0, row_pad), (0, 0)))
    R = xk.shape[1]

    # per-tap weights: (Cout, Cin, KH, KW) -> (KH*KW, Cin, Cout8)
    w_taps = jnp.transpose(w_oihw, (2, 3, 1, 0)).reshape(KH * KW, Cin, Cout)
    w_taps = jnp.pad(w_taps, ((0, 0), (0, 0), (0, Cout8 - Cout))).astype(compute_dtype)

    cparams = pltpu.CompilerParams(
        dimension_semantics=("parallel",),
        vmem_limit_bytes=_pick_vmem_limit(),
    )

    # ---- pass 1: per-image direct conv + fused BN stat partials -------------
    flops = 2 * N * HWp * Cin * KH * KW * Cout8
    bytes_accessed = (xk.size * xk.dtype.itemsize
                      + w_taps.size * w_taps.dtype.itemsize
                      + N * Cout8 * HWp * jnp.dtype(conv_dtype).itemsize
                      + N * 2 * Cout8 * 4)
    conv_cm, stats = pl.pallas_call(
        functools.partial(_conv_stats_kernel, taps=taps, img_w=W, hpw=HPW,
                          hw=HW, hwp=HWp),
        out_shape=(jax.ShapeDtypeStruct((N, Cout8, HWp), conv_dtype),
                   jax.ShapeDtypeStruct((N, 2, Cout8), jnp.float32)),
        grid_spec=pltpu.PrefetchScalarGridSpec(
            num_scalar_prefetch=0,
            grid=(N,),
            in_specs=[pl.BlockSpec((1, R, Cin), lambda n: (n, 0, 0)),
                      pl.BlockSpec((KH * KW, Cin, Cout8), lambda n: (0, 0, 0))],
            out_specs=(pl.BlockSpec((1, Cout8, HWp), lambda n: (n, 0, 0)),
                       pl.BlockSpec((1, 2, Cout8), lambda n: (n, 0, 0))),
        ),
        compiler_params=cparams,
        cost_estimate=pl.CostEstimate(flops=flops, transcendentals=0,
                                      bytes_accessed=bytes_accessed),
    )(xk, w_taps)

    # ---- tiny per-channel math: reduce partials, fold BN into scale/shift ----
    count = jnp.float32(N * H * W)
    ch_sum = jnp.sum(stats[:, 0, :], axis=0)
    ch_sumsq = jnp.sum(stats[:, 1, :], axis=0)
    mean = ch_sum / count
    var = ch_sumsq / count - mean * mean       # biased var (BN normalization)
    inv = lax.rsqrt(var + jnp.float32(eps))
    gamma_p = jnp.pad(gamma.astype(jnp.float32), (0, Cout8 - Cout))
    beta_p = jnp.pad(beta.astype(jnp.float32), (0, Cout8 - Cout))
    scale = (gamma_p * inv).reshape(Cout8, 1)
    shift = (beta_p - mean * gamma_p * inv).reshape(Cout8, 1)

    # ---- pass 2: folded BN + LeakyReLU, streaming, lane-dense, own tiling ----
    per_image_bytes = Cout8 * HWp * (jnp.dtype(conv_dtype).itemsize
                                     + jnp.dtype(out_dtype).itemsize)
    budget = 8 * 1024 * 1024
    Bn = 1
    for cand in range(1, N + 1):
        if N % cand == 0 and cand * per_image_bytes <= budget:
            Bn = cand

    out_cm = pl.pallas_call(
        functools.partial(_bn_act_kernel, neg_slope=float(neg_slope)),
        out_shape=jax.ShapeDtypeStruct((N, Cout8, HWp), out_dtype),
        grid_spec=pltpu.PrefetchScalarGridSpec(
            num_scalar_prefetch=0,
            grid=(N // Bn,),
            in_specs=[pl.BlockSpec((Bn, Cout8, HWp), lambda i: (i, 0, 0)),
                      pl.BlockSpec((Cout8, 1), lambda i: (0, 0)),
                      pl.BlockSpec((Cout8, 1), lambda i: (0, 0))],
            out_specs=pl.BlockSpec((Bn, Cout8, HWp), lambda i: (i, 0, 0)),
        ),
        compiler_params=cparams,
    )(conv_cm, scale, shift)

    # Channel-major == NCHW already: slice off alignment padding and reshape
    # (both are no-ops at the demo shapes) -- no output transpose.
    return out_cm[:, :Cout, :HW].reshape(N, Cout, H, W)


def _reference(x_nchw, w_oihw, gamma, beta, eps=0.8, neg_slope=0.2):
    """Pure-JAX fp32 reference for validation."""
    KH = w_oihw.shape[2]
    p = (KH - 1) // 2
    y = lax.conv_general_dilated(
        x_nchw, w_oihw, window_strides=(1, 1), padding=((p, p), (p, p)),
        dimension_numbers=("NCHW", "OIHW", "NCHW"))
    mean = jnp.mean(y, axis=(0, 2, 3), keepdims=True)
    var = jnp.mean((y - mean) ** 2, axis=(0, 2, 3), keepdims=True)
    yn = (y - mean) * lax.rsqrt(var + eps)
    yn = gamma.reshape(1, -1, 1, 1) * yn + beta.reshape(1, -1, 1, 1)
    return jnp.where(yn >= 0, yn, neg_slope * yn)


if __name__ == "__main__":
    key = jax.random.PRNGKey(0)
    k_x, k_w = jax.random.split(key)

    N, Cin, Cout, H, W = 2, 4, 8, 16, 16
    x = jax.random.normal(k_x, (N, Cin, H, W), dtype=jnp.float32)
    # Conv2d(in_f, out_f, 3, padding=1, bias=False) weight (deterministic init)
    w = jax.random.normal(k_w, (Cout, Cin, 3, 3), dtype=jnp.float32) * 0.1
    # BatchNorm2d(out_f, eps=0.8) affine params at PyTorch init values
    gamma = jnp.ones((Cout,), dtype=jnp.float32)
    beta = jnp.zeros((Cout,), dtype=jnp.float32)

    ref = _reference(x, w, gamma, beta)

    # fp32 MXU path: tight numerical check against the fp32 XLA reference
    out_f32 = jax.block_until_ready(
        conv_block_forward(x, w, gamma, beta, compute_dtype=jnp.float32))
    assert out_f32.shape == (N, Cout, H, W)
    err_f32 = float(jnp.max(jnp.abs(out_f32 - ref)))
    assert err_f32 < 2e-3

    # bf16 MXU path (default perf configuration): bf16 tolerance
    out_bf16 = jax.block_until_ready(conv_block_forward(x, w, gamma, beta))
    assert out_bf16.shape == (N, Cout, H, W)
    err_bf16 = float(jnp.max(jnp.abs(out_bf16 - ref)))
    assert err_bf16 < 5e-2

    print("KERNEL_OK")
</pallas_src>

<mosaic_0001>
module attributes {stable_mosaic.version = 11 : i64} {
  func.func @_conv_stats_kernel(%arg0: i32, %arg1: memref<1x864x4xf32, #tpu.memory_space<vmem>>, %arg2: memref<9x4x8xf32, #tpu.memory_space<vmem>>, %arg3: memref<1x8x256xf32, #tpu.memory_space<vmem>>, %arg4: memref<1x2x8xf32, #tpu.memory_space<vmem>>) attributes {dimension_semantics = [#tpu.dimension_semantics<parallel>], iteration_bounds = array<i64: 2>, scalar_prefetch = 0 : i64, scratch_operands = 0 : i64, tpu.core_type = #tpu.core_type<tc>, window_params = [{transform_indices = @transform_0, window_bounds = array<i64: 1, 864, 4>}, {pipeline_mode = #tpu.pipeline_mode<synchronous>, transform_indices = @transform_1, window_bounds = array<i64: 9, 4, 8>}, {transform_indices = @transform_2, window_bounds = array<i64: 1, 8, 256>}, {transform_indices = @transform_3, window_bounds = array<i64: 1, 2, 8>}]} {
    %cst = arith.constant 0.000000e+00 : f32
    %0 = vector.broadcast %cst : f32 to vector<256x8xf32>
    %c0 = arith.constant 0 : index
    %c0_0 = arith.constant 0 : index
    %c0_1 = arith.constant 0 : index
    %1 = vector.load %arg1[%c0, %c0_0, %c0_1] : memref<1x864x4xf32, #tpu.memory_space<vmem>>, vector<1x256x4xf32>
    %2 = vector.shape_cast %1 : vector<1x256x4xf32> to vector<256x4xf32>
    %c0_2 = arith.constant 0 : index
    %c0_3 = arith.constant 0 : index
    %c0_4 = arith.constant 0 : index
    %3 = vector.load %arg2[%c0_2, %c0_3, %c0_4] : memref<9x4x8xf32, #tpu.memory_space<vmem>>, vector<1x4x8xf32>
    %4 = vector.shape_cast %3 : vector<1x4x8xf32> to vector<4x8xf32>
    %cst_5 = arith.constant dense<0.000000e+00> : vector<256x8xf32>
    %5 = tpu.matmul %2, %4, %cst_5 {dimension_numbers = #tpu.dot_dimension_numbers<[1], [0], [0], [1], [0, 0, 1, 1], [], []>} : vector<256x4xf32>, vector<4x8xf32>, vector<256x8xf32> -> vector<256x8xf32>
    %6 = arith.addf %0, %5 : vector<256x8xf32>
    %c0_6 = arith.constant 0 : index
    %c288 = arith.constant 288 : index
    %c0_7 = arith.constant 0 : index
    %7 = vector.load %arg1[%c0_6, %c288, %c0_7] : memref<1x864x4xf32, #tpu.memory_space<vmem>>, vector<1x256x4xf32>
    %8 = vector.shape_cast %7 : vector<1x256x4xf32> to vector<256x4xf32>
    %c1 = arith.constant 1 : index
    %c0_8 = arith.constant 0 : index
    %c0_9 = arith.constant 0 : index
    %9 = vector.load %arg2[%c1, %c0_8, %c0_9] : memref<9x4x8xf32, #tpu.memory_space<vmem>>, vector<1x4x8xf32>
    %10 = vector.shape_cast %9 : vector<1x4x8xf32> to vector<4x8xf32>
    %cst_10 = arith.constant dense<0.000000e+00> : vector<256x8xf32>
    %11 = tpu.matmul %8, %10, %cst_10 {dimension_numbers = #tpu.dot_dimension_numbers<[1], [0], [0], [1], [0, 0, 1, 1], [], []>} : vector<256x4xf32>, vector<4x8xf32>, vector<256x8xf32> -> vector<256x8xf32>
    %12 = arith.addf %6, %11 : vector<256x8xf32>
    %c0_11 = arith.constant 0 : index
    %c576 = arith.constant 576 : index
    %c0_12 = arith.constant 0 : index
    %13 = vector.load %arg1[%c0_11, %c576, %c0_12] : memref<1x864x4xf32, #tpu.memory_space<vmem>>, vector<1x256x4xf32>
    %14 = vector.shape_cast %13 : vector<1x256x4xf32> to vector<256x4xf32>
    %c2 = arith.constant 2 : index
    %c0_13 = arith.constant 0 : index
    %c0_14 = arith.constant 0 : index
    %15 = vector.load %arg2[%c2, %c0_13, %c0_14] : memref<9x4x8xf32, #tpu.memory_space<vmem>>, vector<1x4x8xf32>
    %16 = vector.shape_cast %15 : vector<1x4x8xf32> to vector<4x8xf32>
    %cst_15 = arith.constant dense<0.000000e+00> : vector<256x8xf32>
    %17 = tpu.matmul %14, %16, %cst_15 {dimension_numbers = #tpu.dot_dimension_numbers<[1], [0], [0], [1], [0, 0, 1, 1], [], []>} : vector<256x4xf32>, vector<4x8xf32>, vector<256x8xf32> -> vector<256x8xf32>
    %18 = arith.addf %12, %17 : vector<256x8xf32>
    %c0_16 = arith.constant 0 : index
    %c16 = arith.constant 16 : index
    %c0_17 = arith.constant 0 : index
    %19 = vector.load %arg1[%c0_16, %c16, %c0_17] : memref<1x864x4xf32, #tpu.memory_space<vmem>>, vector<1x256x4xf32>
    %20 = vector.shape_cast %19 : vector<1x256x4xf32> to vector<256x4xf32>
    %c3 = arith.constant 3 : index
    %c0_18 = arith.constant 0 : index
    %c0_19 = arith.constant 0 : index
    %21 = vector.load %arg2[%c3, %c0_18, %c0_19] : memref<9x4x8xf32, #tpu.memory_space<vmem>>, vector<1x4x8xf32>
    %22 = vector.shape_cast %21 : vector<1x4x8xf32> to vector<4x8xf32>
    %cst_20 = arith.constant dense<0.000000e+00> : vector<256x8xf32>
    %23 = tpu.matmul %20, %22, %cst_20 {dimension_numbers = #tpu.dot_dimension_numbers<[1], [0], [0], [1], [0, 0, 1, 1], [], []>} : vector<256x4xf32>, vector<4x8xf32>, vector<256x8xf32> -> vector<256x8xf32>
    %24 = arith.addf %18, %23 : vector<256x8xf32>
    %c0_21 = arith.constant 0 : index
    %c304 = arith.constant 304 : index
    %c0_22 = arith.constant 0 : index
    %25 = vector.load %arg1[%c0_21, %c304, %c0_22] : memref<1x864x4xf32, #tpu.memory_space<vmem>>, vector<1x256x4xf32>
    %26 = vector.shape_cast %25 : vector<1x256x4xf32> to vector<256x4xf32>
    %c4 = arith.constant 4 : index
    %c0_23 = arith.constant 0 : index
    %c0_24 = arith.constant 0 : index
    %27 = vector.load %arg2[%c4, %c0_23, %c0_24] : memref<9x4x8xf32, #tpu.memory_space<vmem>>, vector<1x4x8xf32>
    %28 = vector.shape_cast %27 : vector<1x4x8xf32> to vector<4x8xf32>
    %cst_25 = arith.constant dense<0.000000e+00> : vector<256x8xf32>
    %29 = tpu.matmul %26, %28, %cst_25 {dimension_numbers = #tpu.dot_dimension_numbers<[1], [0], [0], [1], [0, 0, 1, 1], [], []>} : vector<256x4xf32>, vector<4x8xf32>, vector<256x8xf32> -> vector<256x8xf32>
    %30 = arith.addf %24, %29 : vector<256x8xf32>
    %c0_26 = arith.constant 0 : index
    %c592 = arith.constant 592 : index
    %c0_27 = arith.constant 0 : index
    %31 = vector.load %arg1[%c0_26, %c592, %c0_27] : memref<1x864x4xf32, #tpu.memory_space<vmem>>, vector<1x256x4xf32>
    %32 = vector.shape_cast %31 : vector<1x256x4xf32> to vector<256x4xf32>
    %c5 = arith.constant 5 : index
    %c0_28 = arith.constant 0 : index
    %c0_29 = arith.constant 0 : index
    %33 = vector.load %arg2[%c5, %c0_28, %c0_29] : memref<9x4x8xf32, #tpu.memory_space<vmem>>, vector<1x4x8xf32>
    %34 = vector.shape_cast %33 : vector<1x4x8xf32> to vector<4x8xf32>
    %cst_30 = arith.constant dense<0.000000e+00> : vector<256x8xf32>
    %35 = tpu.matmul %32, %34, %cst_30 {dimension_numbers = #tpu.dot_dimension_numbers<[1], [0], [0], [1], [0, 0, 1, 1], [], []>} : vector<256x4xf32>, vector<4x8xf32>, vector<256x8xf32> -> vector<256x8xf32>
    %36 = arith.addf %30, %35 : vector<256x8xf32>
    %c0_31 = arith.constant 0 : index
    %c32 = arith.constant 32 : index
    %c0_32 = arith.constant 0 : index
    %37 = vector.load %arg1[%c0_31, %c32, %c0_32] : memref<1x864x4xf32, #tpu.memory_space<vmem>>, vector<1x256x4xf32>
    %38 = vector.shape_cast %37 : vector<1x256x4xf32> to vector<256x4xf32>
    %c6 = arith.constant 6 : index
    %c0_33 = arith.constant 0 : index
    %c0_34 = arith.constant 0 : index
    %39 = vector.load %arg2[%c6, %c0_33, %c0_34] : memref<9x4x8xf32, #tpu.memory_space<vmem>>, vector<1x4x8xf32>
    %40 = vector.shape_cast %39 : vector<1x4x8xf32> to vector<4x8xf32>
    %cst_35 = arith.constant dense<0.000000e+00> : vector<256x8xf32>
    %41 = tpu.matmul %38, %40, %cst_35 {dimension_numbers = #tpu.dot_dimension_numbers<[1], [0], [0], [1], [0, 0, 1, 1], [], []>} : vector<256x4xf32>, vector<4x8xf32>, vector<256x8xf32> -> vector<256x8xf32>
    %42 = arith.addf %36, %41 : vector<256x8xf32>
    %c0_36 = arith.constant 0 : index
    %c320 = arith.constant 320 : index
    %c0_37 = arith.constant 0 : index
    %43 = vector.load %arg1[%c0_36, %c320, %c0_37] : memref<1x864x4xf32, #tpu.memory_space<vmem>>, vector<1x256x4xf32>
    %44 = vector.shape_cast %43 : vector<1x256x4xf32> to vector<256x4xf32>
    %c7 = arith.constant 7 : index
    %c0_38 = arith.constant 0 : index
    %c0_39 = arith.constant 0 : index
    %45 = vector.load %arg2[%c7, %c0_38, %c0_39] : memref<9x4x8xf32, #tpu.memory_space<vmem>>, vector<1x4x8xf32>
    %46 = vector.shape_cast %45 : vector<1x4x8xf32> to vector<4x8xf32>
    %cst_40 = arith.constant dense<0.000000e+00> : vector<256x8xf32>
    %47 = tpu.matmul %44, %46, %cst_40 {dimension_numbers = #tpu.dot_dimension_numbers<[1], [0], [0], [1], [0, 0, 1, 1], [], []>} : vector<256x4xf32>, vector<4x8xf32>, vector<256x8xf32> -> vector<256x8xf32>
    %48 = arith.addf %42, %47 : vector<256x8xf32>
    %c0_41 = arith.constant 0 : index
    %c608 = arith.constant 608 : index
    %c0_42 = arith.constant 0 : index
    %49 = vector.load %arg1[%c0_41, %c608, %c0_42] : memref<1x864x4xf32, #tpu.memory_space<vmem>>, vector<1x256x4xf32>
    %50 = vector.shape_cast %49 : vector<1x256x4xf32> to vector<256x4xf32>
    %c8 = arith.constant 8 : index
    %c0_43 = arith.constant 0 : index
    %c0_44 = arith.constant 0 : index
    %51 = vector.load %arg2[%c8, %c0_43, %c0_44] : memref<9x4x8xf32, #tpu.memory_space<vmem>>, vector<1x4x8xf32>
    %52 = vector.shape_cast %51 : vector<1x4x8xf32> to vector<4x8xf32>
    %cst_45 = arith.constant dense<0.000000e+00> : vector<256x8xf32>
    %53 = tpu.matmul %50, %52, %cst_45 {dimension_numbers = #tpu.dot_dimension_numbers<[1], [0], [0], [1], [0, 0, 1, 1], [], []>} : vector<256x4xf32>, vector<4x8xf32>, vector<256x8xf32> -> vector<256x8xf32>
    %54 = arith.addf %48, %53 : vector<256x8xf32>
    %cst_46 = arith.constant dense<0.000000e+00> : vector<8xf32>
    %55 = vector.multi_reduction <add>, %54, %cst_46 [0] : vector<256x8xf32> to vector<8xf32>
    %56 = vector.shape_cast %55 : vector<8xf32> to vector<1x8xf32>
    %57 = arith.mulf %54, %54 : vector<256x8xf32>
    %cst_47 = arith.constant dense<0.000000e+00> : vector<8xf32>
    %58 = vector.multi_reduction <add>, %57, %cst_47 [0] : vector<256x8xf32> to vector<8xf32>
    %59 = vector.shape_cast %58 : vector<8xf32> to vector<1x8xf32>
    %60 = tpu.concatenate %56, %59 in 0 : vector<1x8xf32>, vector<1x8xf32> -> vector<2x8xf32>
    %c0_48 = arith.constant 0 : index
    %c0_49 = arith.constant 0 : index
    %c0_50 = arith.constant 0 : index
    %61 = vector.load %arg4[%c0_48, %c0_49, %c0_50] : memref<1x2x8xf32, #tpu.memory_space<vmem>>, vector<1x2x8xf32>
    %62 = vector.shape_cast %61 : vector<1x2x8xf32> to vector<2x8xf32>
    %63 = vector.shape_cast %60 : vector<2x8xf32> to vector<1x2x8xf32>
    tpu.vector_store %arg4[%c0_48, %c0_49, %c0_50], %63 {strides = array<i32>} : memref<1x2x8xf32, #tpu.memory_space<vmem>>, vector<1x2x8xf32>,
    %64 = tpu.transpose %54, [1, 0] : vector<256x8xf32> -> vector<8x256xf32>
    %c0_51 = arith.constant 0 : index
    %c0_52 = arith.constant 0 : index
    %c0_53 = arith.constant 0 : index
    %65 = vector.load %arg3[%c0_51, %c0_52, %c0_53] : memref<1x8x256xf32, #tpu.memory_space<vmem>>, vector<1x8x256xf32>
    %66 = vector.shape_cast %65 : vector<1x8x256xf32> to vector<8x256xf32>
    %67 = vector.shape_cast %64 : vector<8x256xf32> to vector<1x8x256xf32>
    tpu.vector_store %arg3[%c0_51, %c0_52, %c0_53], %67 {strides = array<i32>} : memref<1x8x256xf32, #tpu.memory_space<vmem>>, vector<1x8x256xf32>,
    return
  }
  func.func @transform_0(%arg0: i32) -> (i32, i32, i32) {
    %c0_i32 = arith.constant 0 : i32
    %c0_i32_0 = arith.constant 0 : i32
    %c0_i32_1 = arith.constant 0 : i32
    return %arg0, %c0_i32, %c0_i32_0 : i32, i32, i32
  }
  func.func @transform_1(%arg0: i32) -> (i32, i32, i32) {
    %c0_i32 = arith.constant 0 : i32
    %c0_i32_0 = arith.constant 0 : i32
    %c0_i32_1 = arith.constant 0 : i32
    %c0_i32_2 = arith.constant 0 : i32
    return %c0_i32, %c0_i32_0, %c0_i32_1 : i32, i32, i32
  }
  func.func @transform_2(%arg0: i32) -> (i32, i32, i32) {
    %c0_i32 = arith.constant 0 : i32
    %c0_i32_0 = arith.constant 0 : i32
    %c0_i32_1 = arith.constant 0 : i32
    return %arg0, %c0_i32, %c0_i32_0 : i32, i32, i32
  }
  func.func @transform_3(%arg0: i32) -> (i32, i32, i32) {
    %c0_i32 = arith.constant 0 : i32
    %c0_i32_0 = arith.constant 0 : i32
    %c0_i32_1 = arith.constant 0 : i32
    return %arg0, %c0_i32, %c0_i32_0 : i32, i32, i32
  }
}

</mosaic_0001>

<bundles_post_ra>
// kernel: tpu_custom_call.1
= control target key start
LH: loop header
LB: loop body
LE: loop exit
PB: predicated region body
PF: predicated region fallthrough
CT: control target
= control target key end

     0   :  { %9 = vsyncpa [#allocation3], 0  ;;  %s6735_s0 = inlined_call_operand.vmem [shape: f32[2,864,4], index: 0, kind: input, shape index: {}]   ;;  %s6736_s1 = inlined_call_operand.vmem [shape: f32[9,4,8], index: 1, kind: input, shape index: {}]   ;;  %s6737_s2 = inlined_call_operand.hbm [shape: f32[2,8,256], index: 2, kind: output, shape index: {0}]   ;;  %s6738_s3 = inlined_call_operand.hbm [shape: f32[2,2,8], index: 3, kind: output, shape index: {1}]  }
   0x1   :  { %11 = vsyncpa [#allocation3 + $0x1], 0 }
   0x2   :  { %12 = vsyncpa [#allocation5], 0 }
   0x3   :  { %14 = vsyncpa [#allocation5 + $0x1], 0  ;;  %s5480_s12 = smov 0   ;;  %s5482_s13 = smov 0  }
   0x4   :  { %s5484_s14 = smov 0   ;;  %s5486_s15 = smov 0  }
   0x5 LB: > { %s5501_s16 = sadd.s32 4294967295, %s5456_s15   ;;  %s3992_s17 = sadd.s32 4294967294, %s5456_s15   ;;  %s5456_s15 = sphi %s5486_s15, %s6853_s15   ;;  %s5452_s14 = sphi %s5484_s14, %s6852_s14   ;;  %s5448_s13 = sphi %s5482_s13, %s6851_s13   ;;  %s5444_s12 = sphi %s5480_s12, %s6850_s12  }
   0x6   : > { %s5505_s18 = sadd.s32 1, %s5456_s15   ;;  %s74_s19 = sadd.s32 1, %s5452_s14 }
   0x7   : > { %s71_s20 = ssub.s32 %s5456_s15, %s5505_s18  ;;  %p84_p0 = scmp.ne.s32.totalorder %s5452_s14, %s5448_s13 }
   0x8   : > { %p72_p1 = scmp.eq.s32.totalorder %s71_s20, 0  ;;  %p85_p2 = scmp.eq.s32.totalorder %s5501_s16, 1 }
   0x9   : > { %p90_p3 = scmp.ne.s32.totalorder %s5448_s13, %s5444_s12  ;;  %p91_p4 = scmp.eq.s32.totalorder %s3992_s17, 1 }
   0xa   : > { %s5516_s21 = scalar_select %p72_p1, %s5452_s14, %s74_s19  }
   0xb   : > { %p5518_p5 = por %p85_p2, %p84_p0  ;;  %p5522_p6 = por %p91_p4, %p90_p3 }
   0xc   : > { %p3995_p7 = scmp.ge.s32.totalorder %s5456_s15, 1  ;;  %p146_p8 = scmp.lt.s32.totalorder %s5456_s15, 3 }
   0xe   : > { %p147_p9 = pnand %p3995_p7, %p146_p8 }
  0x10   : > { %150 = sbr.rel (%p147_p9) target bundleno = 655 (0x28f), region = 28 }
  0x17   : > { %v3999_v0 = vld [vmem:[%s6736_s1 + $0x4] sm:$0xf]  ;;  %vm344_vm0 = vcmask 1043456   ;;  %v5534_v1 = vld [vmem:[%s6736_s1 + $0x10] sm:$0xf]  ;;  %p175_p10 = scmp.lt.s32.totalorder %s5501_s16, 1 }
  0x18   : > { %4609 = vmatprep.subr.msk.mxu1 %vm344_vm0, %v3999_v0  ;;  %4809 = vmatprep.subr.msk.mxu0 %vm344_vm0, %v5534_v1  ;;  %v212_v2 = vld [vmem:[%s6736_s1] sm:$0xf]  ;;  %v4168_v3 = vld [vmem:[%s6736_s1 + $0x14] sm:$0xf]  ;;  %vm247_vm1 = vcmask 31744   ;;  %vm3627_vm2 = vcmask 64512  }
  0x19   : > { %4610 = vmatpush3.msk.msra.mxu1 %vm344_vm0, %v3999_v0  ;;  %4810 = vmatpush3.msk.msra.mxu0 %vm344_vm0, %v5534_v1  ;;  %s176_s5 = scalar_select %p175_p10, %s5501_s16, 1  ;;  %v4202_v9 = vld [vmem:[%s6736_s1 + $0x18] sm:$0xf]  ;;  %v5574_v10 = vld [vmem:[%s6736_s1 + $0x8] sm:$0xf]  ;;  %vm3798_vm3 = vcmask 1040384  }
  0x1a   : > { %4659 = vmatprep.subr.msk.mxu1 %vm344_vm0, %v212_v2  ;;  %4859 = vmatprep.subr.msk.mxu0 %vm344_vm0, %v4168_v3  ;;  %v5693_v28 = vld [vmem:[%s6736_s1 + $0x1c] sm:$0xf]  ;;  %v5856_v61 = vld [vmem:[%s6736_s1 + $0xc] sm:$0xf]  ;;  %s6649_s29 = sand.u32 1, %s5448_s13   ;;  %s4308_s4 = sshll.u32 %s5501_s16, 5 }
  0x1b   : > { %s5317_s6 = smul.u32 864, %s176_s5  ;;  %s3997_s30 = sshll.u32 %s6649_s29, 1  ;;  %vm3800_vm4 = vcmask 58368  }
  0x1c   : > { %s174_s5 = scalar_lea.vmem [#allocation4], %s3997_s30  ;;  %s3874_s10 = scalar_lea.sflag [#allocation5], %s6649_s29 }
  0x1d   : > { %s5555_s9 = scalar_lea.vmem %s6735_s0, %s5317_s6  ;;  %s3901_s6 = sshll.u32 %s174_s5, 4  ;;  %s6660_s6 = int_to_ptr.vmem [resolvable:$true] %s3901_s6 }
  0x1e   : > { %v213_v4 = vld [vmem:[%s5555_s9 + $0x120] sm:$0xff]  ;;  %v1677_v5 = vld [vmem:[%s5555_s9 + $0x130] sm:$0xff]  ;;  %v214_v6 = vld [vmem:[%s5555_s9 + $0x128] sm:$0xff]  ;;  %s5362_s11 = scalar_lea.vmem %s6660_s6, 32  ;;  %s5458_s17 = smov [#allocation4]  }
  0x1f   : > { %4611 = vmatprep.mubr.msk.f32.mxu1 %vm247_vm1, %v213_v4  ;;  %4811 = vmatprep.mubr.msk.f32.mxu0 %vm247_vm1, %v1677_v5  ;;  %v1678_v7 = vld [vmem:[%s5555_s9 + $0x138] sm:$0xff]  ;;  %v5564_v8 = vld [vmem:[%s5555_s9 + $0x140] sm:$0xff]  ;;  %v5579_v11 = vld [vmem:[%s5555_s9 + $0x148] sm:$0xff]  ;;  %p5363_p11 = scmp.ne.s32.totalorder %s6660_s6, %s5362_s11  ;;  %s5366_s19 = sshll.u32 %s5458_s17, 4  ;;  %s5367_s19 = int_to_ptr.vmem [resolvable:$false] %s5366_s19 }
  0x20   : > { %4612 = vmatmul.mubr.msk.f32.vlgmr.msra.gmra.mrb[0].mxu1 %vm247_vm1, %v214_v6  ;;  %4812 = vmatmul.mubr.msk.f32.vlgmr.msra.gmra.mrb[0].mxu0 %vm247_vm1, %v1678_v7  ;;  %v5585_v12 = vld [vmem:[%s5555_s9 + $0x150] sm:$0xff]  ;;  %v5598_v13 = vld [vmem:[%s5555_s9 + $0x158] sm:$0xff]  ;;  %v5601_v14 = vld [vmem:[%s5555_s9 + $0x160] sm:$0xff]  ;;  %s5368_s20 = scalar_lea.vmem %s5367_s19, 64  ;;  %p5369_p0 = scmp.lt.s32.totalorder %s6660_s6, %s5367_s19 }
  0x21   : > { %4660 = vmatpush3.msk.msra.mxu1 %vm344_vm0, %v212_v2  ;;  %4860 = vmatpush3.msk.msra.mxu0 %vm344_vm0, %v4168_v3  ;;  %v5612_v15 = vld [vmem:[%s5555_s9 + $0x168] sm:$0xff]  ;;  %v5615_v16 = vld [vmem:[%s5555_s9 + $0x170] sm:$0xff]  ;;  %v5626_v17 = vld [vmem:[%s5555_s9 + $0x178] sm:$0xff]  ;;  %p5364_p12 = pnand %p5363_p11, %p5518_p5  ;;  %p5370_p1 = scmp.lt.s32.totalorder %s5368_s20, %s5362_s11 }
  0x22   : > { %4614 = vmatprep.mubr.msk.f32.mxu1 %vm247_vm1, %v1677_v5  ;;  %4814 = vmatprep.mubr.msk.f32.mxu0 %vm247_vm1, %v5564_v8  ;;  %v5629_v18 = vld [vmem:[%s5555_s9 + $0x180] sm:$0xff]  ;;  %v5640_v19 = vld [vmem:[%s5555_s9 + $0x188] sm:$0xff]  ;;  %v5643_v20 = vld [vmem:[%s5555_s9 + $0x190] sm:$0xff] }
  0x23   : > { %4909 = vmatprep.subr.msk.mxu0 %vm344_vm0, %v4202_v9  ;;  %4709 = vmatprep.subr.msk.mxu1 %vm344_vm0, %v5574_v10  ;;  %v5654_v21 = vld [vmem:[%s5555_s9 + $0x198] sm:$0xff]  ;;  %v5657_v22 = vld [vmem:[%s5555_s9 + $0x1a0] sm:$0xff]  ;;  %v5668_v23 = vld [vmem:[%s5555_s9 + $0x1a8] sm:$0xff]  ;;  %p5365_p13 = pneg %p5364_p12  ;;  %p5371_p2 = por %p5370_p1, %p5369_p0 }
  0x24   : > { %4615 = vmatmul.mubr.msk.f32.gmra.mrb[2].mxu1 %vm247_vm1, %v1678_v7  ;;  %4815 = vmatmul.mubr.msk.f32.gmra.mrb[2].mxu0 %vm247_vm1, %v5579_v11  ;;  %v5671_v24 = vld [vmem:[%s5555_s9 + $0x250] sm:$0xff]  ;;  %v5682_v25 = vld [vmem:[%s5555_s9 + $0x258] sm:$0xff]  ;;  %v5688_v27 = vld [vmem:[%s5555_s9 + $0x260] sm:$0xff] }
  0x25   : > { %4617 = vmatprep.mubr.msk.f32.mxu1 %vm247_vm1, %v5564_v8  ;;  %4817 = vmatprep.mubr.msk.f32.mxu0 %vm247_vm1, %v5585_v12  ;;  %v5685_v26 = vld [vmem:[%s5555_s9 + $0x1b0] sm:$0xff]  ;;  %v5703_v29 = vld [vmem:[%s5555_s9 + $0x1b8] sm:$0xff]  ;;  %v5706_v30 = vld [vmem:[%s5555_s9 + $0x268] sm:$0xff]  ;;  %p5372_p3 = pnand %p5371_p2, %p5365_p13 }
  0x26   : > { %6786 = vst [vmem:[#allocation8_spill] sm:$0xff] %v5703_v29  ;;  %v5711_v31 = vld [vmem:[%s5555_s9 + $0x1c0] sm:$0xff]  ;;  %v5714_v32 = vld [vmem:[%s5555_s9 + $0x270] sm:$0xff]  ;;  %v5727_v33 = vld [vmem:[%s5555_s9 + $0x1c8] sm:$0xff] }
  0x27   : > { %6787 = vst [vmem:[#allocation9_spill] sm:$0xff] %v5711_v31  ;;  %6788 = vst [vmem:[#allocation10_spill] sm:$0xff] %v5727_v33  ;;  %v5730_v34 = vld [vmem:[%s5555_s9 + $0x278] sm:$0xff]  ;;  %v5733_v35 = vld [vmem:[%s5555_s9 + $0x1d0] sm:$0xff] }
  0x28   : > { %4618 = vmatmul.mubr.msk.f32.gmra.mrb[4].mxu1 %vm247_vm1, %v5579_v11  ;;  %4818 = vmatmul.mubr.msk.f32.gmra.mrb[4].mxu0 %vm247_vm1, %v5598_v13  ;;  %6789 = vst [vmem:[#allocation11_spill] sm:$0xff] %v5733_v35  ;;  %v5736_v36 = vld [vmem:[%s5555_s9 + $0x280] sm:$0xff]  ;;  %v5747_v37 = vld [vmem:[%s5555_s9 + $0x1d8] sm:$0xff]  ;;  %v5750_v38 = vld [vmem:[%s5555_s9 + $0x288] sm:$0xff] }
  0x29   : > { %4620 = vmatprep.mubr.msk.f32.mxu1 %vm247_vm1, %v5585_v12  ;;  %4820 = vmatprep.mubr.msk.f32.mxu0 %vm247_vm1, %v5601_v14  ;;  %6790 = vst [vmem:[#allocation12_spill] sm:$0xff] %v5747_v37  ;;  %v5753_v39 = vld [vmem:[%s5555_s9 + $0x1e0] sm:$0xff]  ;;  %v5756_v40 = vld [vmem:[%s5555_s9 + $0x290] sm:$0xff]  ;;  %v5767_v41 = vld [vmem:[%s5555_s9 + $0x1e8] sm:$0xff] }
  0x2a   : > { %6791 = vst [vmem:[#allocation13_spill] sm:$0xff] %v5753_v39  ;;  %6792 = vst [vmem:[#allocation14_spill] sm:$0xff] %v5767_v41  ;;  %v5770_v42 = vld [vmem:[%s5555_s9 + $0x298] sm:$0xff]  ;;  %v5773_v43 = vld [vmem:[%s5555_s9 + $0x1f0] sm:$0xff] }
  0x2b   : > { %6793 = vst [vmem:[#allocation15_spill] sm:$0xff] %v5773_v43  ;;  %v5776_v44 = vld [vmem:[%s5555_s9 + $0x2a0] sm:$0xff]  ;;  %v5787_v45 = vld [vmem:[%s5555_s9 + $0x1f8] sm:$0xff]  ;;  %v5790_v46 = vld [vmem:[%s5555_s9 + $0x2a8] sm:$0xff] }
  0x2c   : > { %4621 = vmatmul.mubr.msk.f32.gmra.mrb[6].mxu1 %vm247_vm1, %v5598_v13  ;;  %4821 = vmatmul.mubr.msk.f32.gmra.mrb[6].mxu0 %vm247_vm1, %v5612_v15  ;;  %6794 = vst [vmem:[#allocation16_spill] sm:$0xff] %v5787_v45  ;;  %v5793_v47 = vld [vmem:[%s5555_s9 + $0x200] sm:$0xff]  ;;  %v5796_v48 = vld [vmem:[%s5555_s9 + $0x2b0] sm:$0xff]  ;;  %v5807_v49 = vld [vmem:[%s5555_s9 + $0x208] sm:$0xff] }
  0x2d   : > { %4623 = vmatprep.mubr.msk.f32.mxu1 %vm247_vm1, %v5601_v14  ;;  %4823 = vmatprep.mubr.msk.f32.mxu0 %vm247_vm1, %v5615_v16  ;;  %6795 = vst [vmem:[#allocation17_spill] sm:$0xff] %v5793_v47  ;;  %6796 = vst [vmem:[#allocation18_spill] sm:$0xff] %v5807_v49  ;;  %v5810_v50 = vld [vmem:[%s5555_s9 + $0x2b8] sm:$0xff]  ;;  %v5813_v51 = vld [vmem:[%s5555_s9 + $0x210] sm:$0xff] }
  0x2e   : > { %6797 = vst [vmem:[#allocation19_spill] sm:$0xff] %v5813_v51  ;;  %v5816_v52 = vld [vmem:[%s5555_s9 + $0x2c0] sm:$0xff]  ;;  %v5827_v53 = vld [vmem:[%s5555_s9 + $0x218] sm:$0xff]  ;;  %v5830_v54 = vld [vmem:[%s5555_s9 + $0x2c8] sm:$0xff] }
  0x2f   : > { %6798 = vst [vmem:[#allocation20_spill] sm:$0xff] %v5827_v53  ;;  %v180_v55 = vld [vmem:[%s5555_s9] sm:$0xff]  ;;  %v5834_v56 = vld [vmem:[%s5555_s9 + $0x2d0] sm:$0xff]  ;;  %v181_v57 = vld [vmem:[%s5555_s9 + $0x8] sm:$0xff] }
  0x30   : > { %4624 = vmatmul.mubr.msk.f32.gmra.mrb[8].mxu1 %vm247_vm1, %v5612_v15  ;;  %4824 = vmatmul.mubr.msk.f32.gmra.mrb[8].mxu0 %vm247_vm1, %v5626_v17  ;;  %v5845_v58 = vld [vmem:[%s5555_s9 + $0x2d8] sm:$0xff]  ;;  %v5848_v59 = vld [vmem:[%s5555_s9 + $0x10] sm:$0xff]  ;;  %v5851_v60 = vld [vmem:[%s5555_s9 + $0x2e0] sm:$0xff] }
  0x31   : > { %4626 = vmatprep.mubr.msk.f32.mxu1 %vm247_vm1, %v5615_v16  ;;  %4826 = vmatprep.mubr.msk.f32.mxu0 %vm247_vm1, %v5629_v18  ;;  %6799 = vst [vmem:[#allocation21_spill] sm:$0xff] %v5848_v59  ;;  %v5866_v62 = vld [vmem:[%s5555_s9 + $0x18] sm:$0xff]  ;;  %v5869_v63 = vld [vmem:[%s5555_s9 + $0x2e8] sm:$0xff]  ;;  %v5874_v0 = vld [vmem:[%s5555_s9 + $0x20] sm:$0xff] }
  0x32   : > { %6800 = vst [vmem:[#allocation22_spill] sm:$0xff] %v5866_v62  ;;  %6801 = vst [vmem:[#allocation23_spill] sm:$0xff] %v5874_v0  ;;  %v5877_v2 = vld [vmem:[%s5555_s9 + $0x2f0] sm:$0xff]  ;;  %v5890_v3 = vld [vmem:[%s5555_s9 + $0x28] sm:$0xff] }
  0x33   : > { %6802 = vst [vmem:[#allocation24_spill] sm:$0xff] %v5890_v3  ;;  %v5893_v4 = vld [vmem:[%s5555_s9 + $0x2f8] sm:$0xff]  ;;  %v5896_v5 = vld [vmem:[%s5555_s9 + $0x30] sm:$0xff]  ;;  %v5899_v6 = vld [vmem:[%s5555_s9 + $0x300] sm:$0xff] }
  0x34   : > { %4627 = vmatmul.mubr.msk.f32.gmra.mrb[10].mxu1 %vm247_vm1, %v5626_v17  ;;  %4827 = vmatmul.mubr.msk.f32.gmra.mrb[10].mxu0 %vm247_vm1, %v5640_v19  ;;  %6803 = vst [vmem:[#allocation25_spill] sm:$0xff] %v5896_v5  ;;  %v5910_v7 = vld [vmem:[%s5555_s9 + $0x38] sm:$0xff] }
  0x35   : > { %4629 = vmatprep.mubr.msk.f32.mxu1 %vm247_vm1, %v5629_v18  ;;  %4829 = vmatprep.mubr.msk.f32.mxu0 %vm247_vm1, %v5643_v20  ;;  %6804 = vst [vmem:[#allocation26_spill] sm:$0xff] %v5910_v7 }
  0x38   : > { %4630 = vmatmul.mubr.msk.f32.gmra.mrb[12].mxu1 %vm247_vm1, %v5640_v19  ;;  %4830 = vmatmul.mubr.msk.f32.gmra.mrb[12].mxu0 %vm247_vm1, %v5654_v21 }
  0x39   : > { %4632 = vmatprep.mubr.msk.f32.mxu1 %vm247_vm1, %v5643_v20  ;;  %4832 = vmatprep.mubr.msk.f32.mxu0 %vm247_vm1, %v5657_v22 }
  0x3c   : > { %4633 = vmatmul.mubr.msk.f32.gmra.mrb[14].mxu1 %vm247_vm1, %v5654_v21  ;;  %4833 = vmatmul.mubr.msk.f32.gmra.mrb[14].mxu0 %vm247_vm1, %v5668_v23 }
  0x3d   : > { %4635 = vmatprep.mubr.msk.f32.mxu1 %vm247_vm1, %v5657_v22  ;;  %4861 = vmatprep.mubr.msk.f32.mxu0 %vm247_vm1, %v5671_v24 }
  0x40   : > { %4636 = vmatmul.mubr.msk.f32.gmra.mrb[16].mxu1 %vm247_vm1, %v5668_v23  ;;  %4862 = vmatmul.mubr.msk.f32.vlgmr.msra.gmra.mrb[0].mxu0 %vm247_vm1, %v5682_v25 }
  0x41   : > { %4910 = vmatpush3.msk.msra.mxu0 %vm344_vm0, %v4202_v9  ;;  %4638 = vmatprep.mubr.msk.f32.mxu1 %vm247_vm1, %v5685_v26  ;;  %v5913_v9 = vld [vmem:[%s5555_s9 + $0x308] sm:$0xff] }
  0x42   : > { %4864 = vmatprep.mubr.msk.f32.mxu0 %vm247_vm1, %v5688_v27  ;;  %4959 = vmatprep.subr.msk.mxu0 %vm344_vm0, %v5693_v28 }
  0x44   : > { %4639 = vmatmul.mubr.msk.f32.gmra.mrb[18].mxu1 %vm247_vm1, %v5703_v29  ;;  %4865 = vmatmul.mubr.msk.f32.gmra.mrb[2].mxu0 %vm247_vm1, %v5706_v30  ;;  %v6010_v29 = vld [vmem:[%s5555_s9 + $0x90] sm:$0xff] }
  0x45   : > { %4641 = vmatprep.mubr.msk.f32.mxu1 %vm247_vm1, %v5711_v31  ;;  %4867 = vmatprep.mubr.msk.f32.mxu0 %vm247_vm1, %v5714_v32  ;;  %v5993_v31 = vld [vmem:[%s5555_s9 + $0x348] sm:$0xff] }
  0x46   : > { %6815 = vst [vmem:[#allocation37_spill] sm:$0xff] %v5993_v31 }
  0x48   : > { %4642 = vmatmul.mubr.msk.f32.gmra.mrb[20].mxu1 %vm247_vm1, %v5727_v33  ;;  %4868 = vmatmul.mubr.msk.f32.gmra.mrb[4].mxu0 %vm247_vm1, %v5730_v34  ;;  %v5979_v33 = vld [vmem:[%s5555_s9 + $0x340] sm:$0xff] }
  0x49   : > { %4644 = vmatprep.mubr.msk.f32.mxu1 %vm247_vm1, %v5733_v35  ;;  %4870 = vmatprep.mubr.msk.f32.mxu0 %vm247_vm1, %v5736_v36  ;;  %v5976_v35 = vld [vmem:[%s5555_s9 + $0x70] sm:$0xff]  ;;  %6813 = vst [vmem:[#allocation35_spill] sm:$0xff] %v5979_v33 }
  0x4a   : > { %6812 = vst [vmem:[#allocation34_spill] sm:$0xff] %v5976_v35 }
  0x4c   : > { %4645 = vmatmul.mubr.msk.f32.gmra.mrb[22].mxu1 %vm247_vm1, %v5747_v37  ;;  %4871 = vmatmul.mubr.msk.f32.gmra.mrb[6].mxu0 %vm247_vm1, %v5750_v38  ;;  %v5973_v37 = vld [vmem:[%s5555_s9 + $0x338] sm:$0xff] }
  0x4d   : > { %4647 = vmatprep.mubr.msk.f32.mxu1 %vm247_vm1, %v5753_v39  ;;  %4873 = vmatprep.mubr.msk.f32.mxu0 %vm247_vm1, %v5756_v40  ;;  %v5970_v39 = vld [vmem:[%s5555_s9 + $0x68] sm:$0xff]  ;;  %6811 = vst [vmem:[#allocation33_spill] sm:$0xff] %v5973_v37 }
  0x4e   : > { %6810 = vst [vmem:[#allocation32_spill] sm:$0xff] %v5970_v39 }
  0x50   : > { %4648 = vmatmul.mubr.msk.f32.gmra.mrb[24].mxu1 %vm247_vm1, %v5767_v41  ;;  %4874 = vmatmul.mubr.msk.f32.gmra.mrb[8].mxu0 %vm247_vm1, %v5770_v42  ;;  %v5959_v41 = vld [vmem:[%s5555_s9 + $0x330] sm:$0xff] }
  0x51   : > { %4650 = vmatprep.mubr.msk.f32.mxu1 %vm247_vm1, %v5773_v43  ;;  %4876 = vmatprep.mubr.msk.f32.mxu0 %vm247_vm1, %v5776_v44  ;;  %v5956_v43 = vld [vmem:[%s5555_s9 + $0x60] sm:$0xff] }
  0x52   : > { %6809 = vst [vmem:[#allocation31_spill] sm:$0xff] %v5956_v43 }
  0x54   : > { %4651 = vmatmul.mubr.msk.f32.gmra.mrb[26].mxu1 %vm247_vm1, %v5787_v45  ;;  %4877 = vmatmul.mubr.msk.f32.gmra.mrb[10].mxu0 %vm247_vm1, %v5790_v46  ;;  %v5953_v45 = vld [vmem:[%s5555_s9 + $0x328] sm:$0xff] }
  0x55   : > { %4653 = vmatprep.mubr.msk.f32.mxu1 %vm247_vm1, %v5793_v47  ;;  %4879 = vmatprep.mubr.msk.f32.mxu0 %vm247_vm1, %v5796_v48  ;;  %v5950_v47 = vld [vmem:[%s5555_s9 + $0x58] sm:$0xff] }
  0x56   : > { %6808 = vst [vmem:[#allocation30_spill] sm:$0xff] %v5950_v47 }
  0x58   : > { %4654 = vmatmul.mubr.msk.f32.gmra.mrb[28].mxu1 %vm247_vm1, %v5807_v49  ;;  %4880 = vmatmul.mubr.msk.f32.gmra.mrb[12].mxu0 %vm247_vm1, %v5810_v50  ;;  %v5939_v49 = vld [vmem:[%s5555_s9 + $0x320] sm:$0xff] }
  0x59   : > { %4656 = vmatprep.mubr.msk.f32.mxu1 %vm247_vm1, %v5813_v51  ;;  %4882 = vmatprep.mubr.msk.f32.mxu0 %vm247_vm1, %v5816_v52  ;;  %v5936_v51 = vld [vmem:[%s5555_s9 + $0x50] sm:$0xff] }
  0x5a   : > { %6807 = vst [vmem:[#allocation29_spill] sm:$0xff] %v5936_v51 }
  0x5c   : > { %4657 = vmatmul.mubr.msk.f32.gmra.mrb[30].mxu1 %vm247_vm1, %v5827_v53  ;;  %4883 = vmatmul.mubr.msk.f32.gmra.mrb[14].mxu0 %vm247_vm1, %v5830_v54  ;;  %v5933_v53 = vld [vmem:[%s5555_s9 + $0x318] sm:$0xff] }
  0x5d   : > { %4661 = vmatprep.mubr.msk.f32.mxu1 %vm247_vm1, %v180_v55  ;;  %4885 = vmatprep.mubr.msk.f32.mxu0 %vm247_vm1, %v5834_v56  ;;  %v5919_v55 = vld [vmem:[%s5555_s9 + $0x310] sm:$0xff] }
  0x60   : > { %4662 = vmatmul.mubr.msk.f32.vlgmr.msra.gmra.mrb[0].mxu1 %vm247_vm1, %v181_v57  ;;  %4886 = vmatmul.mubr.msk.f32.gmra.mrb[16].mxu0 %vm247_vm1, %v5845_v58  ;;  %v5930_v57 = vld [vmem:[%s5555_s9 + $0x48] sm:$0xff] }
  0x61   : > { %4710 = vmatpush3.msk.msra.mxu1 %vm344_vm0, %v5574_v10  ;;  %4664 = vmatprep.mubr.msk.f32.mxu1 %vm247_vm1, %v5848_v59  ;;  %v5916_v10 = vld [vmem:[%s5555_s9 + $0x40] sm:$0xff]  ;;  %6806 = vst [vmem:[#allocation28_spill] sm:$0xff] %v5930_v57 }
  0x62   : > { %4888 = vmatprep.mubr.msk.f32.mxu0 %vm247_vm1, %v5851_v60  ;;  %4759 = vmatprep.subr.msk.mxu1 %vm344_vm0, %v5856_v61  ;;  %6805 = vst [vmem:[#allocation27_spill] sm:$0xff] %v5916_v10  ;;  %v5996_v59 = vld [vmem:[%s5555_s9 + $0x80] sm:$0xff] }
  0x64   : > { %4665 = vmatmul.mubr.msk.f32.gmra.mrb[2].mxu1 %vm247_vm1, %v5866_v62  ;;  %4889 = vmatmul.mubr.msk.f32.gmra.mrb[18].mxu0 %vm247_vm1, %v5869_v63  ;;  %v5990_v62 = vld [vmem:[%s5555_s9 + $0x78] sm:$0xff] }
  0x65   : > { %4667 = vmatprep.mubr.msk.f32.mxu1 %vm247_vm1, %v5874_v0  ;;  %4891 = vmatprep.mubr.msk.f32.mxu0 %vm247_vm1, %v5877_v2  ;;  %6814 = vst [vmem:[#allocation36_spill] sm:$0xff] %v5990_v62 }
  0x68   : > { %4668 = vmatmul.mubr.msk.f32.gmra.mrb[4].mxu1 %vm247_vm1, %v5890_v3  ;;  %4892 = vmatmul.mubr.msk.f32.gmra.mrb[20].mxu0 %vm247_vm1, %v5893_v4 }
  0x69   : > { %4670 = vmatprep.mubr.msk.f32.mxu1 %vm247_vm1, %v5896_v5  ;;  %4894 = vmatprep.mubr.msk.f32.mxu0 %vm247_vm1, %v5899_v6 }
  0x6c   : > { %4671 = vmatmul.mubr.msk.f32.gmra.mrb[6].mxu1 %vm247_vm1, %v5910_v7  ;;  %4895 = vmatmul.mubr.msk.f32.gmra.mrb[22].mxu0 %vm247_vm1, %v5913_v9 }
  0x6d   : > { %4673 = vmatprep.mubr.msk.f32.mxu1 %vm247_vm1, %v5916_v10  ;;  %4897 = vmatprep.mubr.msk.f32.mxu0 %vm247_vm1, %v5919_v55 }
  0x70   : > { %4674 = vmatmul.mubr.msk.f32.gmra.mrb[8].mxu1 %vm247_vm1, %v5930_v57  ;;  %4898 = vmatmul.mubr.msk.f32.gmra.mrb[24].mxu0 %vm247_vm1, %v5933_v53 }
  0x71   : > { %4676 = vmatprep.mubr.msk.f32.mxu1 %vm247_vm1, %v5936_v51  ;;  %4900 = vmatprep.mubr.msk.f32.mxu0 %vm247_vm1, %v5939_v49 }
  0x74   : > { %4677 = vmatmul.mubr.msk.f32.gmra.mrb[10].mxu1 %vm247_vm1, %v5950_v47  ;;  %4901 = vmatmul.mubr.msk.f32.gmra.mrb[26].mxu0 %vm247_vm1, %v5953_v45 }
  0x75   : > { %4679 = vmatprep.mubr.msk.f32.mxu1 %vm247_vm1, %v5956_v43  ;;  %4903 = vmatprep.mubr.msk.f32.mxu0 %vm247_vm1, %v5959_v41 }
  0x78   : > { %4680 = vmatmul.mubr.msk.f32.gmra.mrb[12].mxu1 %vm247_vm1, %v5970_v39  ;;  %4904 = vmatmul.mubr.msk.f32.gmra.mrb[28].mxu0 %vm247_vm1, %v5973_v37  ;;  %v6015_v37 = vld [vmem:[%s6736_s1 + $0x20] sm:$0xf] }
  0x79   : > { %4682 = vmatprep.mubr.msk.f32.mxu1 %vm247_vm1, %v5976_v35  ;;  %4906 = vmatprep.mubr.msk.f32.mxu0 %vm247_vm1, %v5979_v33  ;;  %v6007_v33 = vld [vmem:[%s5555_s9 + $0x88] sm:$0xff] }
  0x7a   : > { %6816 = vst [vmem:[#allocation38_spill] sm:$0xff] %v6007_v33 }
  0x7c   : > { %4683 = vmatmul.mubr.msk.f32.gmra.mrb[14].mxu1 %vm247_vm1, %v5990_v62  ;;  %4907 = vmatmul.mubr.msk.f32.gmra.mrb[30].mxu0 %vm247_vm1, %v5993_v31  ;;  %v6026_v31 = vld [vmem:[%s5555_s9 + $0x98] sm:$0xff] }
  0x7d   : > { %4685 = vmatprep.mubr.msk.f32.mxu1 %vm247_vm1, %v5996_v59  ;;  %4911 = vmatprep.mubr.msk.f32.mxu0 %vm247_vm1, %v5874_v0  ;;  %v6031_v0 = vld [vmem:[%s5555_s9 + $0xa0] sm:$0xff] }
  0x80   : > { %4686 = vmatmul.mubr.msk.f32.gmra.mrb[16].mxu1 %vm247_vm1, %v6007_v33  ;;  %4912 = vmatmul.mubr.msk.f32.vlgmr.msra.gmra.mrb[0].mxu0 %vm247_vm1, %v5890_v3  ;;  %v897_v3 = vld [vmem:[%s5555_s9 + $0x240] sm:$0xff] }
  0x81   : > { %4960 = vmatpush3.msk.msra.mxu0 %vm344_vm0, %v5693_v28  ;;  %4688 = vmatprep.mubr.msk.f32.mxu1 %vm247_vm1, %v6010_v29  ;;  %v6044_v28 = vld [vmem:[%s5555_s9 + $0xa8] sm:$0xff] }
  0x82   : > { %4914 = vmatprep.mubr.msk.f32.mxu0 %vm247_vm1, %v5896_v5  ;;  %5009 = vmatprep.subr.msk.mxu0 %vm344_vm0, %v6015_v37  ;;  %v6047_v5 = vld [vmem:[%s5555_s9 + $0xb0] sm:$0xff] }
  0x84   : > { %4689 = vmatmul.mubr.msk.f32.gmra.mrb[18].mxu1 %vm247_vm1, %v6026_v31  ;;  %4915 = vmatmul.mubr.msk.f32.gmra.mrb[2].mxu0 %vm247_vm1, %v5910_v7  ;;  %v6058_v7 = vld [vmem:[%s5555_s9 + $0xb8] sm:$0xff] }
  0x85   : > { %4691 = vmatprep.mubr.msk.f32.mxu1 %vm247_vm1, %v6031_v0  ;;  %4917 = vmatprep.mubr.msk.f32.mxu0 %vm247_vm1, %v5916_v10  ;;  %v6061_v10 = vld [vmem:[%s5555_s9 + $0xc0] sm:$0xff] }
  0x88   : > { %4692 = vmatmul.mubr.msk.f32.gmra.mrb[20].mxu1 %vm247_vm1, %v6044_v28  ;;  %4918 = vmatmul.mubr.msk.f32.gmra.mrb[4].mxu0 %vm247_vm1, %v5930_v57  ;;  %v6072_v57 = vld [vmem:[%s5555_s9 + $0xc8] sm:$0xff] }
  0x89   : > { %4694 = vmatprep.mubr.msk.f32.mxu1 %vm247_vm1, %v6047_v5  ;;  %4920 = vmatprep.mubr.msk.f32.mxu0 %vm247_vm1, %v5936_v51  ;;  %v6075_v51 = vld [vmem:[%s5555_s9 + $0xd0] sm:$0xff] }
  0x8c   : > { %4695 = vmatmul.mubr.msk.f32.gmra.mrb[22].mxu1 %vm247_vm1, %v6058_v7  ;;  %4921 = vmatmul.mubr.msk.f32.gmra.mrb[6].mxu0 %vm247_vm1, %v5950_v47  ;;  %v6086_v47 = vld [vmem:[%s5555_s9 + $0xd8] sm:$0xff] }
  0x8d   : > { %4697 = vmatprep.mubr.msk.f32.mxu1 %vm247_vm1, %v6061_v10  ;;  %4923 = vmatprep.mubr.msk.f32.mxu0 %vm247_vm1, %v5956_v43  ;;  %v6089_v43 = vld [vmem:[%s5555_s9 + $0xe0] sm:$0xff] }
  0x90   : > { %4698 = vmatmul.mubr.msk.f32.gmra.mrb[24].mxu1 %vm247_vm1, %v6072_v57  ;;  %4924 = vmatmul.mubr.msk.f32.gmra.mrb[8].mxu0 %vm247_vm1, %v5970_v39  ;;  %v6100_v39 = vld [vmem:[%s5555_s9 + $0xe8] sm:$0xff] }
  0x91   : > { %4700 = vmatprep.mubr.msk.f32.mxu1 %vm247_vm1, %v6075_v51  ;;  %4926 = vmatprep.mubr.msk.f32.mxu0 %vm247_vm1, %v5976_v35  ;;  %v6103_v35 = vld [vmem:[%s5555_s9 + $0xf0] sm:$0xff] }
  0x94   : > { %4701 = vmatmul.mubr.msk.f32.gmra.mrb[26].mxu1 %vm247_vm1, %v6086_v47  ;;  %4927 = vmatmul.mubr.msk.f32.gmra.mrb[10].mxu0 %vm247_vm1, %v5990_v62  ;;  %v6114_v62 = vld [vmem:[%s5555_s9 + $0xf8] sm:$0xff] }
  0x95   : > { %4703 = vmatprep.mubr.msk.f32.mxu1 %vm247_vm1, %v6089_v43  ;;  %4929 = vmatprep.mubr.msk.f32.mxu0 %vm247_vm1, %v5996_v59 }
  0x98   : > { %4704 = vmatmul.mubr.msk.f32.gmra.mrb[28].mxu1 %vm247_vm1, %v6100_v39  ;;  %4930 = vmatmul.mubr.msk.f32.gmra.mrb[12].mxu0 %vm247_vm1, %v6007_v33  ;;  %v898_v33 = vld [vmem:[%s5555_s9 + $0x248] sm:$0xff] }
  0x99   : > { %4706 = vmatprep.mubr.msk.f32.mxu1 %vm247_vm1, %v6103_v35  ;;  %4932 = vmatprep.mubr.msk.f32.mxu0 %vm247_vm1, %v6010_v29 }
  0x9c   : > { %4707 = vmatmul.mubr.msk.f32.gmra.mrb[30].mxu1 %vm247_vm1, %v6114_v62  ;;  %4933 = vmatmul.mubr.msk.f32.gmra.mrb[14].mxu0 %vm247_vm1, %v6026_v31 }
  0x9d   : > { %4711 = vmatprep.mubr.msk.f32.mxu1 %vm247_vm1, %v897_v3  ;;  %4935 = vmatprep.mubr.msk.f32.mxu0 %vm247_vm1, %v6031_v0  ;;  %v6833_v3 = vld [vmem:[#allocation28_spill] sm:$0xff] }
  0xa0   : > { %4712 = vmatmul.mubr.msk.f32.vlgmr.msra.gmra.mrb[0].mxu1 %vm247_vm1, %v898_v33  ;;  %4936 = vmatmul.mubr.msk.f32.gmra.mrb[16].mxu0 %vm247_vm1, %v6044_v28  ;;  %v2487_v33 = vld [vmem:[%s5555_s9 + $0x110] sm:$0xff] }
  0xa1   : > { %4760 = vmatpush3.msk.msra.mxu1 %vm344_vm0, %v5856_v61  ;;  %4714 = vmatprep.mubr.msk.f32.mxu1 %vm247_vm1, %v5671_v24  ;;  %v6169_v24 = vld [vmem:[%s5555_s9 + $0x100] sm:$0xff]  ;;  %v2488_v61 = vld [vmem:[%s5555_s9 + $0x118] sm:$0xff] }
  0xa2   : > { %4938 = vmatprep.mubr.msk.f32.mxu0 %vm247_vm1, %v6047_v5  ;;  %5059 = vmatprep.subr.msk.mxu1 %vm344_vm0, %v5534_v1 }
  0xa4   : > { %4715 = vmatmul.mubr.msk.f32.gmra.mrb[2].mxu1 %vm247_vm1, %v5682_v25  ;;  %4939 = vmatmul.mubr.msk.f32.gmra.mrb[18].mxu0 %vm247_vm1, %v6058_v7  ;;  %v6180_v25 = vld [vmem:[%s5555_s9 + $0x108] sm:$0xff] }
  0xa5   : > { %4717 = vmatprep.mubr.msk.f32.mxu1 %vm247_vm1, %v5688_v27  ;;  %4941 = vmatprep.mubr.msk.f32.mxu0 %vm247_vm1, %v6061_v10 }
  0xa8   : > { %4718 = vmatmul.mubr.msk.f32.gmra.mrb[4].mxu1 %vm247_vm1, %v5706_v30  ;;  %4942 = vmatmul.mubr.msk.f32.gmra.mrb[20].mxu0 %vm247_vm1, %v6072_v57 }
  0xa9   : > { %4720 = vmatprep.mubr.msk.f32.mxu1 %vm247_vm1, %v5714_v32  ;;  %4944 = vmatprep.mubr.msk.f32.mxu0 %vm247_vm1, %v6075_v51 }
  0xac   : > { %4721 = vmatmul.mubr.msk.f32.gmra.mrb[6].mxu1 %vm247_vm1, %v5730_v34  ;;  %4945 = vmatmul.mubr.msk.f32.gmra.mrb[22].mxu0 %vm247_vm1, %v6086_v47 }
  0xad   : > { %4723 = vmatprep.mubr.msk.f32.mxu1 %vm247_vm1, %v5736_v36  ;;  %4947 = vmatprep.mubr.msk.f32.mxu0 %vm247_vm1, %v6089_v43 }
  0xb0   : > { %4724 = vmatmul.mubr.msk.f32.gmra.mrb[8].mxu1 %vm247_vm1, %v5750_v38  ;;  %4948 = vmatmul.mubr.msk.f32.gmra.mrb[24].mxu0 %vm247_vm1, %v6100_v39 }
  0xb1   : > { %4726 = vmatprep.mubr.msk.f32.mxu1 %vm247_vm1, %v5756_v40  ;;  %4950 = vmatprep.mubr.msk.f32.mxu0 %vm247_vm1, %v6103_v35 }
  0xb4   : > { %4727 = vmatmul.mubr.msk.f32.gmra.mrb[10].mxu1 %vm247_vm1, %v5770_v42  ;;  %4951 = vmatmul.mubr.msk.f32.gmra.mrb[26].mxu0 %vm247_vm1, %v6114_v62 }
  0xb5   : > { %4729 = vmatprep.mubr.msk.f32.mxu1 %vm247_vm1, %v5776_v44  ;;  %4953 = vmatprep.mubr.msk.f32.mxu0 %vm247_vm1, %v6169_v24 }
  0xb8   : > { %4730 = vmatmul.mubr.msk.f32.gmra.mrb[12].mxu1 %vm247_vm1, %v5790_v46  ;;  %4954 = vmatmul.mubr.msk.f32.gmra.mrb[28].mxu0 %vm247_vm1, %v6180_v25 }
  0xb9   : > { %4732 = vmatprep.mubr.msk.f32.mxu1 %vm247_vm1, %v5796_v48  ;;  %4956 = vmatprep.mubr.msk.f32.mxu0 %vm247_vm1, %v2487_v33  ;;  %v6834_v33 = vld [vmem:[#allocation16_spill] sm:$0xff] }
  0xbc   : > { %4733 = vmatmul.mubr.msk.f32.gmra.mrb[14].mxu1 %vm247_vm1, %v5810_v50  ;;  %4957 = vmatmul.mubr.msk.f32.gmra.mrb[30].mxu0 %vm247_vm1, %v2488_v61  ;;  %v6835_v61 = vld [vmem:[#allocation29_spill] sm:$0xff] }
  0xbd   : > { %4735 = vmatprep.mubr.msk.f32.mxu1 %vm247_vm1, %v5816_v52  ;;  %4961 = vmatprep.mubr.msk.f32.mxu0 %vm247_vm1, %v5564_v8  ;;  %v6817_v8 = vld [vmem:[#allocation33_spill] sm:$0xff] }
  0xc0   : > { %4736 = vmatmul.mubr.msk.f32.gmra.mrb[16].mxu1 %vm247_vm1, %v5830_v54  ;;  %4962 = vmatmul.mubr.msk.f32.vlgmr.msra.gmra.mrb[0].mxu0 %vm247_vm1, %v5579_v11  ;;  %v6818_v11 = vld [vmem:[#allocation8_spill] sm:$0xff] }
  0xc1   : > { %5010 = vmatpush3.msk.msra.mxu0 %vm344_vm0, %v6015_v37  ;;  %4738 = vmatprep.mubr.msk.f32.mxu1 %vm247_vm1, %v5834_v56  ;;  %v6832_v37 = vld [vmem:[#allocation15_spill] sm:$0xff] }
  0xc2   : > { %4964 = vmatprep.mubr.msk.f32.mxu0 %vm247_vm1, %v5585_v12  ;;  %v6819_v12 = vld [vmem:[#allocation21_spill] sm:$0xff] }
  0xc4   : > { %4739 = vmatmul.mubr.msk.f32.gmra.mrb[18].mxu1 %vm247_vm1, %v5845_v58  ;;  %4965 = vmatmul.mubr.msk.f32.gmra.mrb[2].mxu0 %vm247_vm1, %v5598_v13  ;;  %v6820_v13 = vld [vmem:[#allocation9_spill] sm:$0xff] }
  0xc5   : > { %4741 = vmatprep.mubr.msk.f32.mxu1 %vm247_vm1, %v5851_v60  ;;  %4967 = vmatprep.mubr.msk.f32.mxu0 %vm247_vm1, %v5601_v14  ;;  %v6821_v14 = vld [vmem:[#allocation22_spill] sm:$0xff] }
  0xc8   : > { %4742 = vmatmul.mubr.msk.f32.gmra.mrb[20].mxu1 %vm247_vm1, %v5869_v63  ;;  %4968 = vmatmul.mubr.msk.f32.gmra.mrb[4].mxu0 %vm247_vm1, %v5612_v15  ;;  %v6822_v15 = vld [vmem:[#allocation10_spill] sm:$0xff] }
  0xc9   : > { %4744 = vmatprep.mubr.msk.f32.mxu1 %vm247_vm1, %v5877_v2  ;;  %4970 = vmatprep.mubr.msk.f32.mxu0 %vm247_vm1, %v5615_v16  ;;  %v6823_v16 = vld [vmem:[#allocation23_spill] sm:$0xff] }
  0xcc   : > { %4745 = vmatmul.mubr.msk.f32.gmra.mrb[22].mxu1 %vm247_vm1, %v5893_v4  ;;  %4971 = vmatmul.mubr.msk.f32.gmra.mrb[6].mxu0 %vm247_vm1, %v5626_v17  ;;  %v6824_v17 = vld [vmem:[#allocation11_spill] sm:$0xff] }
  0xcd   : > { %4747 = vmatprep.mubr.msk.f32.mxu1 %vm247_vm1, %v5899_v6  ;;  %4973 = vmatprep.mubr.msk.f32.mxu0 %vm247_vm1, %v5629_v18  ;;  %v6825_v18 = vld [vmem:[#allocation24_spill] sm:$0xff] }
  0xd0   : > { %4748 = vmatmul.mubr.msk.f32.gmra.mrb[24].mxu1 %vm247_vm1, %v5913_v9  ;;  %4974 = vmatmul.mubr.msk.f32.gmra.mrb[8].mxu0 %vm247_vm1, %v5640_v19  ;;  %v6826_v19 = vld [vmem:[#allocation12_spill] sm:$0xff] }
  0xd1   : > { %4750 = vmatprep.mubr.msk.f32.mxu1 %vm247_vm1, %v5919_v55  ;;  %4976 = vmatprep.mubr.msk.f32.mxu0 %vm247_vm1, %v5643_v20  ;;  %v6827_v20 = vld [vmem:[#allocation25_spill] sm:$0xff] }
  0xd4   : > { %4751 = vmatmul.mubr.msk.f32.gmra.mrb[26].mxu1 %vm247_vm1, %v5933_v53  ;;  %4977 = vmatmul.mubr.msk.f32.gmra.mrb[10].mxu0 %vm247_vm1, %v5654_v21  ;;  %v6828_v21 = vld [vmem:[#allocation13_spill] sm:$0xff] }
  0xd5   : > { %4753 = vmatprep.mubr.msk.f32.mxu1 %vm247_vm1, %v5939_v49  ;;  %4979 = vmatprep.mubr.msk.f32.mxu0 %vm247_vm1, %v5657_v22  ;;  %v6830_v22 = vld [vmem:[#allocation14_spill] sm:$0xff] }
  0xd8   : > { %4754 = vmatmul.mubr.msk.f32.gmra.mrb[28].mxu1 %vm247_vm1, %v5953_v45  ;;  %4980 = vmatmul.mubr.msk.f32.gmra.mrb[12].mxu0 %vm247_vm1, %v5668_v23  ;;  %v6831_v23 = vld [vmem:[#allocation27_spill] sm:$0xff] }
  0xd9   : > { %4756 = vmatprep.mubr.msk.f32.mxu1 %vm247_vm1, %v5959_v41  ;;  %4982 = vmatprep.mubr.msk.f32.mxu0 %vm247_vm1, %v5685_v26 }
  0xdc   : > { %4757 = vmatmul.mubr.msk.f32.gmra.mrb[30].mxu1 %vm247_vm1, %v6817_v8  ;;  %4983 = vmatmul.mubr.msk.f32.gmra.mrb[14].mxu0 %vm247_vm1, %v6818_v11  ;;  %v6844_v8 = vld [vmem:[#allocation36_spill] sm:$0xff] }
  0xdd   : > { %4761 = vmatprep.mubr.msk.f32.mxu1 %vm247_vm1, %v6819_v12  ;;  %4985 = vmatprep.mubr.msk.f32.mxu0 %vm247_vm1, %v6820_v13  ;;  %v6836_v12 = vld [vmem:[#allocation17_spill] sm:$0xff] }
  0xe0   : > { %4762 = vmatmul.mubr.msk.f32.vlgmr.msra.gmra.mrb[0].mxu1 %vm247_vm1, %v6821_v14  ;;  %4986 = vmatmul.mubr.msk.f32.gmra.mrb[16].mxu0 %vm247_vm1, %v6822_v15  ;;  %v6837_v14 = vld [vmem:[#allocation30_spill] sm:$0xff] }
  0xe1   : > { %5060 = vmatpush3.msk.msra.mxu1 %vm344_vm0, %v5534_v1  ;;  %4764 = vmatprep.mubr.msk.f32.mxu1 %vm247_vm1, %v6823_v16  ;;  %v6829_v1 = vld [vmem:[#allocation26_spill] sm:$0xff] }
  0xe2   : > { %4988 = vmatprep.mubr.msk.f32.mxu0 %vm247_vm1, %v6824_v17  ;;  %v6838_v16 = vld [vmem:[#allocation18_spill] sm:$0xff] }
  0xe4   : > { %4765 = vmatmul.mubr.msk.f32.gmra.mrb[2].mxu1 %vm247_vm1, %v6825_v18  ;;  %4989 = vmatmul.mubr.msk.f32.gmra.mrb[18].mxu0 %vm247_vm1, %v6826_v19  ;;  %v6839_v18 = vld [vmem:[#allocation31_spill] sm:$0xff] }
  0xe5   : > { %4767 = vmatprep.mubr.msk.f32.mxu1 %vm247_vm1, %v6827_v20  ;;  %4991 = vmatprep.mubr.msk.f32.mxu0 %vm247_vm1, %v6828_v21  ;;  %v6840_v20 = vld [vmem:[#allocation19_spill] sm:$0xff] }
  0xe8   : > { %4768 = vmatmul.mubr.msk.f32.gmra.mrb[4].mxu1 %vm247_vm1, %v6829_v1  ;;  %4992 = vmatmul.mubr.msk.f32.gmra.mrb[20].mxu0 %vm247_vm1, %v6830_v22  ;;  %v6307_v1 = vld [vmem:[%s5555_s9 + $0x220] sm:$0xff] }
  0xe9   : > { %4770 = vmatprep.mubr.msk.f32.mxu1 %vm247_vm1, %v6831_v23  ;;  %4994 = vmatprep.mubr.msk.f32.mxu0 %vm247_vm1, %v6832_v37  ;;  %v6841_v23 = vld [vmem:[#allocation32_spill] sm:$0xff] }
  0xec   : > { %4771 = vmatmul.mubr.msk.f32.gmra.mrb[6].mxu1 %vm247_vm1, %v6833_v3  ;;  %4995 = vmatmul.mubr.msk.f32.gmra.mrb[22].mxu0 %vm247_vm1, %v6834_v33  ;;  %v6842_v3 = vld [vmem:[#allocation20_spill] sm:$0xff] }
  0xed   : > { %4773 = vmatprep.mubr.msk.f32.mxu1 %vm247_vm1, %v6835_v61  ;;  %4997 = vmatprep.mubr.msk.f32.mxu0 %vm247_vm1, %v6836_v12  ;;  %v6843_v61 = vld [vmem:[#allocation34_spill] sm:$0xff] }
  0xf0   : > { %4774 = vmatmul.mubr.msk.f32.gmra.mrb[8].mxu1 %vm247_vm1, %v6837_v14  ;;  %4998 = vmatmul.mubr.msk.f32.gmra.mrb[24].mxu0 %vm247_vm1, %v6838_v16  ;;  %v6318_v14 = vld [vmem:[%s5555_s9 + $0x228] sm:$0xff] }
  0xf1   : > { %4776 = vmatprep.mubr.msk.f32.mxu1 %vm247_vm1, %v6839_v18  ;;  %5000 = vmatprep.mubr.msk.f32.mxu0 %vm247_vm1, %v6840_v20  ;;  %v2877_v18 = vld [vmem:[%s5555_s9 + $0x230] sm:$0xff] }
  0xf4   : > { %4777 = vmatmul.mubr.msk.f32.gmra.mrb[10].mxu1 %vm247_vm1, %v6841_v23  ;;  %5001 = vmatmul.mubr.msk.f32.gmra.mrb[26].mxu0 %vm247_vm1, %v6842_v3  ;;  %v2878_v23 = vld [vmem:[%s5555_s9 + $0x238] sm:$0xff] }
  0xf5   : > { %4779 = vmatprep.mubr.msk.f32.mxu1 %vm247_vm1, %v6843_v61  ;;  %5003 = vmatprep.mubr.msk.f32.mxu0 %vm247_vm1, %v6307_v1  ;;  %v6845_v3 = vld [vmem:[#allocation38_spill] sm:$0xff] }
  0xf8   : > { %4780 = vmatmul.mubr.msk.f32.gmra.mrb[12].mxu1 %vm247_vm1, %v6844_v8  ;;  %5004 = vmatmul.mubr.msk.f32.gmra.mrb[28].mxu0 %vm247_vm1, %v6318_v14 }
  0xf9   : > { %4782 = vmatprep.mubr.msk.f32.mxu1 %vm247_vm1, %v5996_v59  ;;  %5006 = vmatprep.mubr.msk.f32.mxu0 %vm247_vm1, %v2877_v18 }
  0xfc   : > { %4783 = vmatmul.mubr.msk.f32.gmra.mrb[14].mxu1 %vm247_vm1, %v6845_v3  ;;  %5007 = vmatmul.mubr.msk.f32.gmra.mrb[30].mxu0 %vm247_vm1, %v2878_v23 }
  0xfd   : > { %4785 = vmatprep.mubr.msk.f32.mxu1 %vm247_vm1, %v6010_v29  ;;  %5011 = vmatprep.mubr.msk.f32.mxu0 %vm247_vm1, %v5688_v27  ;;  %v6847_v27 = vld [vmem:[#allocation35_spill] sm:$0xff]  ;;  %v3267_v29 = vld [vmem:[%s5555_s9 + $0x350] sm:$0xff] }
 0x100   : > { %4786 = vmatmul.mubr.msk.f32.gmra.mrb[16].mxu1 %vm247_vm1, %v6026_v31  ;;  %5012 = vmatmul.mubr.msk.f32.vlgmr.msra.gmra.mrb[0].mxu0 %vm247_vm1, %v5706_v30  ;;  %v6848_v30 = vld [vmem:[#allocation20_spill] sm:$0xff]  ;;  %v6849_v31 = vld [vmem:[#allocation37_spill] sm:$0xff] }
 0x101   : > { %4788 = vmatprep.mubr.msk.f32.mxu1 %vm247_vm1, %v6031_v0  ;;  %5014 = vmatprep.mubr.msk.f32.mxu0 %vm247_vm1, %v5714_v32  ;;  %v3268_v32 = vld [vmem:[%s5555_s9 + $0x358] sm:$0xff]  ;;  %s6658_s9 = scalar_lea.hbm %s6738_s3, %s4308_s4 }
 0x104   : > { %4789 = vmatmul.mubr.msk.f32.gmra.mrb[18].mxu1 %vm247_vm1, %v6044_v28  ;;  %5015 = vmatmul.mubr.msk.f32.gmra.mrb[2].mxu0 %vm247_vm1, %v5730_v34 }
 0x105   : > { %4791 = vmatprep.mubr.msk.f32.mxu1 %vm247_vm1, %v6047_v5  ;;  %5017 = vmatprep.mubr.msk.f32.mxu0 %vm247_vm1, %v5736_v36 }
 0x108   : > { %4792 = vmatmul.mubr.msk.f32.gmra.mrb[20].mxu1 %vm247_vm1, %v6058_v7  ;;  %5018 = vmatmul.mubr.msk.f32.gmra.mrb[4].mxu0 %vm247_vm1, %v5750_v38 }
 0x109   : > { %4794 = vmatprep.mubr.msk.f32.mxu1 %vm247_vm1, %v6061_v10  ;;  %5020 = vmatprep.mubr.msk.f32.mxu0 %vm247_vm1, %v5756_v40 }
 0x10c   : > { %4795 = vmatmul.mubr.msk.f32.gmra.mrb[22].mxu1 %vm247_vm1, %v6072_v57  ;;  %5021 = vmatmul.mubr.msk.f32.gmra.mrb[6].mxu0 %vm247_vm1, %v5770_v42 }
 0x10d   : > { %4797 = vmatprep.mubr.msk.f32.mxu1 %vm247_vm1, %v6075_v51  ;;  %5023 = vmatprep.mubr.msk.f32.mxu0 %vm247_vm1, %v5776_v44 }
 0x110   : > { %4798 = vmatmul.mubr.msk.f32.gmra.mrb[24].mxu1 %vm247_vm1, %v6086_v47  ;;  %5024 = vmatmul.mubr.msk.f32.gmra.mrb[8].mxu0 %vm247_vm1, %v5790_v46 }
 0x111   : > { %4800 = vmatprep.mubr.msk.f32.mxu1 %vm247_vm1, %v6089_v43  ;;  %5026 = vmatprep.mubr.msk.f32.mxu0 %vm247_vm1, %v5796_v48 }
 0x114   : > { %4801 = vmatmul.mubr.msk.f32.gmra.mrb[26].mxu1 %vm247_vm1, %v6100_v39  ;;  %5027 = vmatmul.mubr.msk.f32.gmra.mrb[10].mxu0 %vm247_vm1, %v5810_v50 }
 0x115   : > { %4803 = vmatprep.mubr.msk.f32.mxu1 %vm247_vm1, %v6103_v35  ;;  %5029 = vmatprep.mubr.msk.f32.mxu0 %vm247_vm1, %v5816_v52 }
 0x118   : > { %4804 = vmatmul.mubr.msk.f32.gmra.mrb[28].mxu1 %vm247_vm1, %v6114_v62  ;;  %5030 = vmatmul.mubr.msk.f32.gmra.mrb[12].mxu0 %vm247_vm1, %v5830_v54 }
 0x119   : > { %4806 = vmatprep.mubr.msk.f32.mxu1 %vm247_vm1, %v6169_v24  ;;  %5032 = vmatprep.mubr.msk.f32.mxu0 %vm247_vm1, %v5834_v56 }
 0x11c   : > { %4807 = vmatmul.mubr.msk.f32.gmra.mrb[30].mxu1 %vm247_vm1, %v6180_v25  ;;  %5033 = vmatmul.mubr.msk.f32.gmra.mrb[14].mxu0 %vm247_vm1, %v5845_v58 }
 0x11d   : > { %4835 = vmatprep.mubr.msk.f32.mxu1 %vm247_vm1, %v5685_v26  ;;  %5035 = vmatprep.mubr.msk.f32.mxu0 %vm247_vm1, %v5851_v60  ;;  %v6846_v26 = vld [vmem:[#allocation33_spill] sm:$0xff] }
 0x120   : > { %4836 = vmatmul.mubr.msk.f32.vlgmr.msra.gmra.mrb[16].mxu1 %vm247_vm1, %v6818_v11  ;;  %5036 = vmatmul.mubr.msk.f32.gmra.mrb[16].mxu0 %vm247_vm1, %v5869_v63 }
 0x121   : > { %4838 = vmatprep.mubr.msk.f32.mxu1 %vm247_vm1, %v6820_v13  ;;  %5038 = vmatprep.mubr.msk.f32.mxu0 %vm247_vm1, %v5877_v2 }
 0x124   : > { %4839 = vmatmul.mubr.msk.f32.gmra.mrb[18].mxu1 %vm247_vm1, %v6822_v15  ;;  %5039 = vmatmul.mubr.msk.f32.gmra.mrb[18].mxu0 %vm247_vm1, %v5893_v4 }
 0x125   : > { %4841 = vmatprep.mubr.msk.f32.mxu1 %vm247_vm1, %v6824_v17  ;;  %5041 = vmatprep.mubr.msk.f32.mxu0 %vm247_vm1, %v5899_v6 }
 0x128   : > { %4842 = vmatmul.mubr.msk.f32.gmra.mrb[20].mxu1 %vm247_vm1, %v6826_v19  ;;  %5042 = vmatmul.mubr.msk.f32.gmra.mrb[20].mxu0 %vm247_vm1, %v5913_v9 }
 0x129   : > { %4844 = vmatprep.mubr.msk.f32.mxu1 %vm247_vm1, %v6828_v21  ;;  %5044 = vmatprep.mubr.msk.f32.mxu0 %vm247_vm1, %v5919_v55 }
 0x12c   : > { %4845 = vmatmul.mubr.msk.f32.gmra.mrb[22].mxu1 %vm247_vm1, %v6830_v22  ;;  %5045 = vmatmul.mubr.msk.f32.gmra.mrb[22].mxu0 %vm247_vm1, %v5933_v53 }
 0x12d   : > { %4847 = vmatprep.mubr.msk.f32.mxu1 %vm247_vm1, %v6832_v37  ;;  %5047 = vmatprep.mubr.msk.f32.mxu0 %vm247_vm1, %v5939_v49 }
 0x130   : > { %4848 = vmatmul.mubr.msk.f32.gmra.mrb[24].mxu1 %vm247_vm1, %v6834_v33  ;;  %5048 = vmatmul.mubr.msk.f32.gmra.mrb[24].mxu0 %vm247_vm1, %v5953_v45 }
 0x131   : > { %4850 = vmatprep.mubr.msk.f32.mxu1 %vm247_vm1, %v6836_v12  ;;  %5050 = vmatprep.mubr.msk.f32.mxu0 %vm247_vm1, %v5959_v41 }
 0x134   : > { %4851 = vmatmul.mubr.msk.f32.gmra.mrb[26].mxu1 %vm247_vm1, %v6838_v16  ;;  %5051 = vmatmul.mubr.msk.f32.gmra.mrb[26].mxu0 %vm247_vm1, %v6846_v26 }
 0x135   : > { %4853 = vmatprep.mubr.msk.f32.mxu1 %vm247_vm1, %v6840_v20  ;;  %5053 = vmatprep.mubr.msk.f32.mxu0 %vm247_vm1, %v6847_v27 }
 0x138   : > { %4854 = vmatmul.mubr.msk.f32.gmra.mrb[28].mxu1 %vm247_vm1, %v6848_v30  ;;  %5054 = vmatmul.mubr.msk.f32.gmra.mrb[28].mxu0 %vm247_vm1, %v6849_v31 }
 0x139   : > { %4856 = vmatprep.mubr.msk.f32.mxu1 %vm247_vm1, %v6307_v1  ;;  %5056 = vmatprep.mubr.msk.f32.mxu0 %vm247_vm1, %v3267_v29 }
 0x13c   : > { %4857 = vmatmul.mubr.msk.f32.gmra.mrb[30].mxu1 %vm247_vm1, %v6318_v14  ;;  %5057 = vmatmul.mubr.msk.f32.gmra.mrb[30].mxu0 %vm247_vm1, %v3268_v32 }
 0x1b3   : > { %v4763_v34 = vpop.f32.mrb[0].mxu1 }
 0x1b4   : > { %v1486_v35 = vpop.f32.mrb[1].mxu1 }
 0x1b7   : > { %v4766_v36 = vpop.f32.mrb[2].mxu1 }
 0x1b8   : > { %v1496_v38 = vpop.f32.mrb[3].mxu1 }
 0x1bb   : > { %v4769_v39 = vpop.f32.mrb[4].mxu1 }
 0x1bc   : > { %v1506_v40 = vpop.f32.mrb[5].mxu1 }
 0x1bf   : > { %v4772_v41 = vpop.f32.mrb[6].mxu1 }
 0x1c0   : > { %v1516_v42 = vpop.f32.mrb[7].mxu1 }
 0x1c3   : > { %v4775_v43 = vpop.f32.mrb[8].mxu1 }
 0x1c4   : > { %v6460_v44 = vpop.f32.mrb[9].mxu1 }
 0x1c7   : > { %v6462_v45 = vpop.f32.mrb[10].mxu1 }
 0x1c8   : > { %v6464_v46 = vpop.f32.mrb[11].mxu1 }
 0x1cb   : > { %v6466_v47 = vpop.f32.mrb[12].mxu1 }
 0x1cc   : > { %v6468_v48 = vpop.f32.mrb[13].mxu1 }
 0x1cf   : > { %v6470_v49 = vpop.f32.mrb[14].mxu1 }
 0x1d0   : > { %v6472_v50 = vpop.f32.mrb[15].mxu1 }
 0x1d3   : > { %v5013_v51 = vpop.f32.mrb[0].mxu0 }
 0x1d4   : > { %v5061_v52 = vadd.f32 %v5013_v51, %v4763_v34  ;;  %v3436_v53 = vpop.f32.mrb[1].mxu0 }
 0x1d5   : > { %v5062_v54 = vadd.f32 %v3436_v53, %v1486_v35 }
 0x1d6   : > { %v3629_v56 = vsel %vm3627_vm2, %v5061_v52, 0.0  ;;  %v3698_v58 = vmul.f32 %v5061_v52, %v5061_v52 }
 0x1d7   : > { %v3628_v59 = vsel %vm3627_vm2, %v5062_v54, 0.0  ;;  %v3697_v60 = vmul.f32 %v5062_v54, %v5062_v54  ;;  %v5016_v62 = vpop.f32.mrb[2].mxu0  ;;  %3802 = vxpose.xlu0.b32.start [1/16] (narrow) %v5062_v54, 8 }
 0x1d8   : > { %v3730_v63 = vsel %vm3627_vm2, %v3698_v58, 0.0  ;;  %v3630_v0 = vadd.f32 %v3629_v56, %v3628_v59  ;;  %v5063_v2 = vadd.f32 %v5016_v62, %v4766_v36  ;;  %v3446_v4 = vpop.f32.mrb[3].mxu0 }
 0x1d9   : > { %v3729_v5 = vsel %vm3627_vm2, %v3697_v60, 0.0  ;;  %v5064_v6 = vadd.f32 %v3446_v4, %v1496_v38 }
 0x1da   : > { %v3731_v7 = vadd.f32 %v3730_v63, %v3729_v5  ;;  %v3700_v9 = vmul.f32 %v5063_v2, %v5063_v2  ;;  %v3633_v8 = vsel %vm3627_vm2, %v5063_v2, 0.0 }
 0x1db   : > { %v3631_v10 = vsel %vm3627_vm2, %v5064_v6, 0.0  ;;  %v3699_v55 = vmul.f32 %v5064_v6, %v5064_v6  ;;  %v5019_v57 = vpop.f32.mrb[4].mxu0  ;;  %3803 = vxpose.xlu0.b32.cont [2/16] (narrow) %v5061_v52, 8 }
 0x1dc   : > { %v3632_v28 = vadd.f32 %v3631_v10, %v3630_v0  ;;  %v5065_v24 = vadd.f32 %v5019_v57, %v4769_v39  ;;  %v3456_v25 = vpop.f32.mrb[5].mxu0  ;;  %v3734_v19 = vsel %vm3627_vm2, %v3700_v9, 0.0 }
 0x1dd   : > { %v3732_v11 = vsel %vm3627_vm2, %v3699_v55, 0.0  ;;  %v5066_v13 = vadd.f32 %v3456_v25, %v1506_v40 }
 0x1de   : > { %v3733_v15 = vadd.f32 %v3732_v11, %v3731_v7  ;;  %v3634_v17 = vadd.f32 %v3633_v8, %v3632_v28  ;;  %v3702_v21 = vmul.f32 %v5065_v24, %v5065_v24  ;;  %v3637_v3 = vsel %vm3627_vm2, %v5065_v24, 0.0 }
 0x1df   : > { %v3635_v22 = vsel %vm3627_vm2, %v5066_v13, 0.0  ;;  %v3701_v37 = vmul.f32 %v5066_v13, %v5066_v13  ;;  %v5022_v33 = vpop.f32.mrb[6].mxu0  ;;  %3804 = vxpose.xlu0.b32.cont [3/16] (narrow) %v5064_v6, 8 }
 0x1e0   : > { %v3636_v12 = vadd.f32 %v3635_v22, %v3634_v17  ;;  %v3735_v16 = vadd.f32 %v3734_v19, %v3733_v15  ;;  %v6483_v20 = vadd.f32 %v5022_v33, %v4772_v41  ;;  %v3466_v1 = vpop.f32.mrb[7].mxu0  ;;  %v3738_v26 = vsel %vm3627_vm2, %v3702_v21, 0.0 }
 0x1e1   : > { %v3736_v61 = vsel %vm3627_vm2, %v3701_v37, 0.0  ;;  %v5068_v14 = vadd.f32 %v3466_v1, %v1516_v42 }
 0x1e2   : > { %v3737_v18 = vadd.f32 %v3736_v61, %v3735_v16  ;;  %v3638_v23 = vadd.f32 %v3637_v3, %v3636_v12  ;;  %v3704_v27 = vmul.f32 %v6483_v20, %v6483_v20  ;;  %v3641_v38 = vsel %vm3627_vm2, %v6483_v20, 0.0 }
 0x1e3   : > { %v3639_v29 = vsel %vm3627_vm2, %v5068_v14, 0.0  ;;  %v3703_v30 = vmul.f32 %v5068_v14, %v5068_v14  ;;  %v5025_v31 = vpop.f32.mrb[8].mxu0  ;;  %3805 = vxpose.xlu0.b32.cont [4/16] (narrow) %v5063_v2, 8 }
 0x1e4   : > { %v3640_v32 = vadd.f32 %v3639_v29, %v3638_v23  ;;  %v3739_v34 = vadd.f32 %v3738_v26, %v3737_v18  ;;  %v6491_v35 = vadd.f32 %v5025_v31, %v4775_v43  ;;  %v3476_v36 = vpop.f32.mrb[9].mxu0  ;;  %v3742_v51 = vsel %vm3627_vm2, %v3704_v27, 0.0 }
 0x1e5   : > { %v3740_v39 = vsel %vm3627_vm2, %v3703_v30, 0.0  ;;  %v6497_v40 = vadd.f32 %v3476_v36, %v6460_v44 }
 0x1e6   : > { %v3741_v41 = vadd.f32 %v3740_v39, %v3739_v34  ;;  %v3642_v42 = vadd.f32 %v3641_v38, %v3640_v32  ;;  %v3706_v52 = vmul.f32 %v6491_v35, %v6491_v35  ;;  %v3645_v60 = vsel %vm3627_vm2, %v6491_v35, 0.0 }
 0x1e7   : > { %v3643_v43 = vsel %vm3627_vm2, %v6497_v40, 0.0  ;;  %v3705_v53 = vmul.f32 %v6497_v40, %v6497_v40  ;;  %v5028_v54 = vpop.f32.mrb[10].mxu0  ;;  %3806 = vxpose.xlu0.b32.cont [5/16] (narrow) %v5066_v13, 8 }
 0x1e8   : > { %v3644_v56 = vadd.f32 %v3643_v43, %v3642_v42  ;;  %v3743_v58 = vadd.f32 %v3742_v51, %v3741_v41  ;;  %v6507_v44 = vadd.f32 %v5028_v54, %v6462_v45  ;;  %v3486_v59 = vpop.f32.mrb[11].mxu0  ;;  %v3746_v4 = vsel %vm3627_vm2, %v3706_v52, 0.0 }
 0x1e9   : > { %v3744_v62 = vsel %vm3627_vm2, %v3705_v53, 0.0  ;;  %v6513_v63 = vadd.f32 %v3486_v59, %v6464_v46 }
 0x1ea   : > { %v3745_v0 = vadd.f32 %v3744_v62, %v3743_v58  ;;  %v3646_v2 = vadd.f32 %v3645_v60, %v3644_v56  ;;  %v3708_v5 = vmul.f32 %v6507_v44, %v6507_v44  ;;  %v3649_v57 = vsel %vm3627_vm2, %v6507_v44, 0.0 }
 0x1eb   : > { %v3647_v45 = vsel %vm3627_vm2, %v6513_v63, 0.0  ;;  %v3707_v6 = vmul.f32 %v6513_v63, %v6513_v63  ;;  %v5031_v7 = vpop.f32.mrb[12].mxu0  ;;  %3807 = vxpose.xlu0.b32.cont [6/16] (narrow) %v5065_v24, 8 }
 0x1ec   : > { %v3648_v9 = vadd.f32 %v3647_v45, %v3646_v2  ;;  %v3747_v10 = vadd.f32 %v3746_v4, %v3745_v0  ;;  %v6523_v46 = vadd.f32 %v5031_v7, %v6466_v47  ;;  %v3496_v55 = vpop.f32.mrb[13].mxu0  ;;  %v3750_v13 = vsel %vm3627_vm2, %v3708_v5, 0.0 }
 0x1ed   : > { %v3748_v28 = vsel %vm3627_vm2, %v3707_v6, 0.0  ;;  %v6529_v25 = vadd.f32 %v3496_v55, %v6468_v48 }
 0x1ee   : > { %v3749_v8 = vadd.f32 %v3748_v28, %v3747_v10  ;;  %v3650_v11 = vadd.f32 %v3649_v57, %v3648_v9  ;;  %v3710_v24 = vmul.f32 %v6523_v46, %v6523_v46  ;;  %v3653_v37 = vsel %vm3627_vm2, %v6523_v46, 0.0 }
 0x1ef   : > { %v3651_v47 = vsel %vm3627_vm2, %v6529_v25, 0.0  ;;  %v3709_v15 = vmul.f32 %v6529_v25, %v6529_v25  ;;  %v5034_v17 = vpop.f32.mrb[14].mxu0  ;;  %3808 = vxpose.xlu0.b32.cont [7/16] (narrow) %v5068_v14, 8 }
 0x1f0   : > { %v3652_v19 = vadd.f32 %v3651_v47, %v3650_v11  ;;  %v3751_v21 = vadd.f32 %v3750_v13, %v3749_v8  ;;  %v6539_v48 = vadd.f32 %v5034_v17, %v6470_v49  ;;  %v3506_v22 = vpop.f32.mrb[15].mxu0  ;;  %v3754_v3 = vsel %vm3627_vm2, %v3710_v24, 0.0 }
 0x1f1   : > { %v3752_v33 = vsel %vm3627_vm2, %v3709_v15, 0.0  ;;  %v6545_v12 = vadd.f32 %v3506_v22, %v6472_v50 }
 0x1f2   : > { %v3753_v16 = vadd.f32 %v3752_v33, %v3751_v21  ;;  %v3654_v1 = vadd.f32 %v3653_v37, %v3652_v19  ;;  %v3712_v61 = vmul.f32 %v6539_v48, %v6539_v48  ;;  %v3657_v31 = vsel %vm3627_vm2, %v6539_v48, 0.0 }
 0x1f3   : > { %v3655_v49 = vsel %vm3627_vm2, %v6545_v12, 0.0  ;;  %v3711_v14 = vmul.f32 %v6545_v12, %v6545_v12  ;;  %v5037_v18 = vpop.f32.mrb[16].mxu0  ;;  %3809 = vxpose.xlu0.b32.cont [8/16] (narrow) %v6483_v20, 8  ;;  %v4837_v23 = vpop.f32.mrb[16].mxu1 }
 0x1f4   : > { %v3656_v26 = vadd.f32 %v3655_v49, %v3654_v1  ;;  %v3755_v50 = vadd.f32 %v3754_v3, %v3753_v16  ;;  %v5077_v27 = vadd.f32 %v5037_v18, %v4837_v23  ;;  %v1956_v29 = vpop.f32.mrb[17].mxu1  ;;  %v3516_v30 = vpop.f32.mrb[17].mxu0  ;;  %v3758_v39 = vsel %vm3627_vm2, %v3712_v61, 0.0 }
 0x1f5   : > { %v3756_v32 = vsel %vm3627_vm2, %v3711_v14, 0.0  ;;  %v5078_v34 = vadd.f32 %v3516_v30, %v1956_v29 }
 0x1f6   : > { %v3757_v36 = vadd.f32 %v3756_v32, %v3755_v50  ;;  %v3658_v38 = vadd.f32 %v3657_v31, %v3656_v26  ;;  %v3714_v41 = vmul.f32 %v5077_v27, %v5077_v27  ;;  %v3661_v59 = vsel %vm3627_vm2, %v5077_v27, 0.0 }
 0x1f7   : > { %v3659_v42 = vsel %vm3627_vm2, %v5078_v34, 0.0  ;;  %v3713_v20 = vmul.f32 %v5078_v34, %v5078_v34  ;;  %v5040_v51 = vpop.f32.mrb[18].mxu0  ;;  %3810 = vxpose.xlu0.b32.cont [9/16] (narrow) %v6497_v40, 8  ;;  %3834 = vxpose.xlu1.b32.start [1/16] (narrow) %v5078_v34, 8  ;;  %v4840_v52 = vpop.f32.mrb[18].mxu1 }
 0x1f8   : > { %v3660_v43 = vadd.f32 %v3659_v42, %v3658_v38  ;;  %v3759_v53 = vadd.f32 %v3758_v39, %v3757_v36  ;;  %v5079_v54 = vadd.f32 %v5040_v51, %v4840_v52  ;;  %v1966_v56 = vpop.f32.mrb[19].mxu1  ;;  %v3526_v58 = vpop.f32.mrb[19].mxu0  ;;  %v3762_v4 = vsel %vm3627_vm2, %v3714_v41, 0.0 }
 0x1f9   : > { %v3760_v60 = vsel %vm3627_vm2, %v3713_v20, 0.0  ;;  %v5080_v62 = vadd.f32 %v3526_v58, %v1966_v56 }
 0x1fa   : > { %v3761_v0 = vadd.f32 %v3760_v60, %v3759_v53  ;;  %v3662_v2 = vadd.f32 %v3661_v59, %v3660_v43  ;;  %v3716_v5 = vmul.f32 %v5079_v54, %v5079_v54  ;;  %v3665_v8 = vsel %vm3627_vm2, %v5079_v54, 0.0 }
 0x1fb   : > { %v3663_v45 = vsel %vm3627_vm2, %v5080_v62, 0.0  ;;  %v3715_v40 = vmul.f32 %v5080_v62, %v5080_v62  ;;  %v5043_v6 = vpop.f32.mrb[20].mxu0  ;;  %3811 = vxpose.xlu0.b32.cont [10/16] (narrow) %v6491_v35, 8  ;;  %3835 = vxpose.xlu1.b32.cont [2/16] (narrow) %v5077_v27, 8  ;;  %v4843_v7 = vpop.f32.mrb[20].mxu1 }
 0x1fc   : > { %v3664_v9 = vadd.f32 %v3663_v45, %v3662_v2  ;;  %v3763_v10 = vadd.f32 %v3762_v4, %v3761_v0  ;;  %v6566_v55 = vadd.f32 %v5043_v6, %v4843_v7  ;;  %v1976_v57 = vpop.f32.mrb[21].mxu1  ;;  %v3536_v28 = vpop.f32.mrb[21].mxu0  ;;  %v3766_v15 = vsel %vm3627_vm2, %v3716_v5, 0.0 }
 0x1fd   : > { %v3764_v11 = vsel %vm3627_vm2, %v3715_v40, 0.0  ;;  %v5082_v13 = vadd.f32 %v3536_v28, %v1976_v57 }
 0x1fe   : > { %v3765_v24 = vadd.f32 %v3764_v11, %v3763_v10  ;;  %v3666_v47 = vadd.f32 %v3665_v8, %v3664_v9  ;;  %v3718_v35 = vmul.f32 %v6566_v55, %v6566_v55  ;;  %v3669_v61 = vsel %vm3627_vm2, %v6566_v55, 0.0 }
 0x1ff   : > { %v3667_v17 = vsel %vm3627_vm2, %v5082_v13, 0.0  ;;  %v3717_v19 = vmul.f32 %v5082_v13, %v5082_v13  ;;  %v5046_v21 = vpop.f32.mrb[22].mxu0  ;;  %3812 = vxpose.xlu0.b32.cont [11/16] (narrow) %v6513_v63, 8  ;;  %3836 = vxpose.xlu1.b32.cont [3/16] (narrow) %v5080_v62, 8  ;;  %v4846_v22 = vpop.f32.mrb[22].mxu1 }
 0x200   : > { %v3668_v37 = vadd.f32 %v3667_v17, %v3666_v47  ;;  %v3767_v33 = vadd.f32 %v3766_v15, %v3765_v24  ;;  %v6575_v16 = vadd.f32 %v5046_v21, %v4846_v22  ;;  %v1986_v1 = vpop.f32.mrb[23].mxu1  ;;  %v3546_v3 = vpop.f32.mrb[23].mxu0  ;;  %v3770_v26 = vsel %vm3627_vm2, %v3718_v35, 0.0 }
 0x201   : > { %v3768_v49 = vsel %vm3627_vm2, %v3717_v19, 0.0  ;;  %v5084_v14 = vadd.f32 %v3546_v3, %v1986_v1 }
 0x202   : > { %v3769_v18 = vadd.f32 %v3768_v49, %v3767_v33  ;;  %v3670_v23 = vadd.f32 %v3669_v61, %v3668_v37  ;;  %v3720_v63 = vmul.f32 %v6575_v16, %v6575_v16  ;;  %v3673_v39 = vsel %vm3627_vm2, %v6575_v16, 0.0 }
 0x203   : > { %v3671_v50 = vsel %vm3627_vm2, %v5084_v14, 0.0  ;;  %v3719_v27 = vmul.f32 %v5084_v14, %v5084_v14  ;;  %v5049_v29 = vpop.f32.mrb[24].mxu0  ;;  %3813 = vxpose.xlu0.b32.cont [12/16] (narrow) %v6507_v44, 8  ;;  %3837 = vxpose.xlu1.b32.cont [4/16] (narrow) %v5079_v54, 8  ;;  %v4849_v30 = vpop.f32.mrb[24].mxu1 }
 0x204   : > { %v3672_v31 = vadd.f32 %v3671_v50, %v3670_v23  ;;  %v3771_v32 = vadd.f32 %v3770_v26, %v3769_v18  ;;  %v6585_v34 = vadd.f32 %v5049_v29, %v4849_v30  ;;  %v1996_v36 = vpop.f32.mrb[25].mxu1  ;;  %v3556_v38 = vpop.f32.mrb[25].mxu0  ;;  %v3774_v52 = vsel %vm3627_vm2, %v3720_v63, 0.0 }
 0x205   : > { %v3772_v41 = vsel %vm3627_vm2, %v3719_v27, 0.0  ;;  %v6590_v42 = vadd.f32 %v3556_v38, %v1996_v36 }
 0x206   : > { %v3773_v20 = vadd.f32 %v3772_v41, %v3771_v32  ;;  %v3674_v51 = vadd.f32 %v3673_v39, %v3672_v31  ;;  %v3722_v44 = vmul.f32 %v6585_v34, %v6585_v34  ;;  %v3677_v2 = vsel %vm3627_vm2, %v6585_v34, 0.0 }
 0x207   : > { %v3675_v43 = vsel %vm3627_vm2, %v6590_v42, 0.0  ;;  %v3721_v53 = vmul.f32 %v6590_v42, %v6590_v42  ;;  %v5052_v54 = vpop.f32.mrb[26].mxu0  ;;  %3814 = vxpose.xlu0.b32.cont [13/16] (narrow) %v6529_v25, 8  ;;  %3838 = vxpose.xlu1.b32.cont [5/16] (narrow) %v5082_v13, 8  ;;  %v4852_v56 = vpop.f32.mrb[26].mxu1 }
 0x208   : > { %v3676_v58 = vadd.f32 %v3675_v43, %v3674_v51  ;;  %v3775_v59 = vadd.f32 %v3774_v52, %v3773_v20  ;;  %v6600_v60 = vadd.f32 %v5052_v54, %v4852_v56  ;;  %v2006_v62 = vpop.f32.mrb[27].mxu1  ;;  %v3566_v0 = vpop.f32.mrb[27].mxu0  ;;  %v3778_v6 = vsel %vm3627_vm2, %v3722_v44, 0.0 }
 0x209   : > { %v3776_v4 = vsel %vm3627_vm2, %v3721_v53, 0.0  ;;  %v6605_v5 = vadd.f32 %v3566_v0, %v2006_v62 }
 0x20a   : > { %v3777_v45 = vadd.f32 %v3776_v4, %v3775_v59  ;;  %v3678_v40 = vadd.f32 %v3677_v2, %v3676_v58  ;;  %v3724_v25 = vmul.f32 %v6600_v60, %v6600_v60  ;;  %v3681_v47 = vsel %vm3627_vm2, %v6600_v60, 0.0 }
 0x20b   : > { %v3679_v7 = vsel %vm3627_vm2, %v6605_v5, 0.0  ;;  %v3723_v9 = vmul.f32 %v6605_v5, %v6605_v5  ;;  %v5055_v10 = vpop.f32.mrb[28].mxu0  ;;  %3815 = vxpose.xlu0.b32.cont [14/16] (narrow) %v6523_v46, 8  ;;  %3839 = vxpose.xlu1.b32.cont [6/16] (narrow) %v6566_v55, 8  ;;  %v4855_v57 = vpop.f32.mrb[28].mxu1 }
 0x20c   : > { %v3680_v28 = vadd.f32 %v3679_v7, %v3678_v40  ;;  %v3779_v8 = vadd.f32 %v3778_v6, %v3777_v45  ;;  %v6616_v11 = vadd.f32 %v5055_v10, %v4855_v57  ;;  %v2016_v13 = vpop.f32.mrb[29].mxu1  ;;  %v3576_v24 = vpop.f32.mrb[29].mxu0  ;;  %v3782_v21 = vsel %vm3627_vm2, %v3724_v25, 0.0 }
 0x20d   : > { %v3780_v15 = vsel %vm3627_vm2, %v3723_v9, 0.0  ;;  %v5090_v35 = vadd.f32 %v3576_v24, %v2016_v13 }
 0x20e   : > { %v3781_v17 = vadd.f32 %v3780_v15, %v3779_v8  ;;  %v3682_v19 = vadd.f32 %v3681_v47, %v3680_v28  ;;  %v3726_v46 = vmul.f32 %v6616_v11, %v6616_v11  ;;  %v3685_v23 = vsel %vm3627_vm2, %v6616_v11, 0.0 }
 0x20f   : > { %v3683_v55 = vsel %vm3627_vm2, %v5090_v35, 0.0  ;;  %v3725_v22 = vmul.f32 %v5090_v35, %v5090_v35  ;;  %v5058_v37 = vpop.f32.mrb[30].mxu0  ;;  %3816 = vxpose.xlu0.b32.cont [15/16] (narrow) %v6545_v12, 8  ;;  %3840 = vxpose.xlu1.b32.cont [7/16] (narrow) %v5084_v14, 8  ;;  %v4858_v33 = vpop.f32.mrb[30].mxu1 }
 0x210   : > { %v3684_v1 = vadd.f32 %v3683_v55, %v3682_v19  ;;  %v3783_v3 = vadd.f32 %v3782_v21, %v3781_v17  ;;  %v6626_v61 = vadd.f32 %v5058_v37, %v4858_v33  ;;  %v2026_v49 = vpop.f32.mrb[31].mxu1  ;;  %v3586_v18 = vpop.f32.mrb[31].mxu0  ;;  %v3786_v29 = vsel %vm3627_vm2, %v3726_v46, 0.0 }
 0x211   : > { %v3784_v26 = vsel %vm3627_vm2, %v3725_v22, 0.0  ;;  %v6631_v63 = vadd.f32 %v3586_v18, %v2026_v49 }
 0x212   : > { %v3785_v50 = vadd.f32 %v3784_v26, %v3783_v3  ;;  %v3686_v27 = vadd.f32 %v3685_v23, %v3684_v1  ;;  %v3728_v12 = vmul.f32 %v6626_v61, %v6626_v61  ;;  %v3689_v36 = vsel %vm3627_vm2, %v6626_v61, 0.0 }
 0x213   : > { %v3687_v14 = vsel %vm3627_vm2, %v6631_v63, 0.0  ;;  %v3727_v30 = vmul.f32 %v6631_v63, %v6631_v63  ;;  %3817 = vxpose.xlu0.b32.end [16/16] (narrow) %v6539_v48, 8  ;;  %3841 = vxpose.xlu1.b32.cont [8/16] (narrow) %v6575_v16, 8 }
 0x214   : > { %v3688_v31 = vadd.f32 %v3687_v14, %v3686_v27  ;;  %v3787_v32 = vadd.f32 %v3786_v29, %v3785_v50  ;;  %v3790_v20 = vsel %vm3627_vm2, %v3728_v12, 0.0 }
 0x215   : > { %v3788_v38 = vsel %vm3627_vm2, %v3727_v30, 0.0 }
 0x216   : > { %v3690_v39 = vadd.f32 %v3689_v36, %v3688_v31  ;;  %v3789_v41 = vadd.f32 %v3788_v38, %v3787_v32 }
 0x217   : > { %3842 = vxpose.xlu1.b32.cont [9/16] (narrow) %v6590_v42, 8 }
 0x218   : > { %v3691_v51 = vrot.slane %v3690_v39, 4  ;;  %v3791_v52 = vadd.f32 %v3790_v20, %v3789_v41 }
 0x21a   : > { %v3692_v44 = vadd.f32 %v3691_v51, %v3690_v39  ;;  %v3792_v48 = vrot.slane %v3791_v52, 4 }
 0x21b   : > { %3843 = vxpose.xlu1.b32.cont [10/16] (narrow) %v6585_v34, 8 }
 0x21c   : > { %v3693_v16 = vrot.slane %v3692_v44, 2  ;;  %v3793_v43 = vadd.f32 %v3792_v48, %v3791_v52 }
 0x21e   : > { %v3694_v53 = vadd.f32 %v3693_v16, %v3692_v44  ;;  %v3794_v54 = vrot.slane %v3793_v43, 2 }
 0x21f   : > { %3844 = vxpose.xlu1.b32.cont [11/16] (narrow) %v6605_v5, 8 }
 0x220   : > { %v3695_v56 = vrot.slane %v3694_v53, 1  ;;  %v3795_v42 = vadd.f32 %v3794_v54, %v3793_v43 }
 0x222   : > { %v3796_v58 = vrot.slane %v3795_v42, 1  ;;  %v3696_v34 = vadd.f32 %v3695_v56, %v3694_v53 }
 0x223   : > { %3845 = vxpose.xlu1.b32.cont [12/16] (narrow) %v6600_v60, 8 }
 0x224   : > { %v3797_v59 = vadd.f32 %v3796_v58, %v3795_v42 }
 0x226   : > { %v3799_v62 = vsel %vm3798_vm3, %v3696_v34, %v3797_v59 }
 0x227   : > { %3846 = vxpose.xlu1.b32.cont [13/16] (narrow) %v5090_v35, 8  ;;  %3801 = vst.msk [vmem:[%s174_s5] sm:$0x3] %vm3800_vm4, %v3799_v62 }
 0x228   : > { %5375 = shalt.err (!%p5372_p3)
}
 0x229   : > { %s5376_s24 = scalar_lea.hbm %s6658_s9, 32  ;;  %s5380_s27 = scalar_lea.hbm %s6738_s3, 64 }
 0x22a   : > { %p5377_p4 = scmp.ne.s32.totalorder %s6658_s9, %s5376_s24  ;;  %p5381_p9 = scmp.lt.u32.totalorder %s6658_s9, %s6738_s3 }
 0x22b   : > { %p5382_p10 = scmp.lt.u32.totalorder %s5380_s27, %s5376_s24  ;;  %p5384_p12 = scmp.lt.u32.totalorder %s5376_s24, %s6658_s9 }
 0x22c   : > { %p5378_p7 = pnand %p5377_p4, %p5518_p5 }
 0x22d   : > { %p5383_p11 = por %p5382_p10, %p5381_p9 }
 0x22e   : > { %p5379_p8 = pneg %p5378_p7 }
 0x22f   : > { %p5385_p13 = por %p5384_p12, %p5383_p11 }
 0x231   : > { %p5386_p0 = pnand %p5385_p13, %p5379_p8 }
 0x233   : > { %5389 = shalt.err (!%p5386_p0)
}
 0x234   : > { %5319 = dma.vmem_to_hbm [thread:$0]  (%p5518_p5), %s6660_s6, 32, %s6658_s9, %s3874_s10   ;;  %3847 = vxpose.xlu1.b32.cont [14/16] (narrow) %v6616_v11, 8 }
 0x235   : > { %s3996_s4 = sshll.u32 %s6649_s29, 4  ;;  %s4311_s8 = sshll.u32 %s5501_s16, 8 }
 0x236   : > { %s167_s5 = scalar_lea.vmem [#allocation2], %s3996_s4  ;;  %s6694_s6 = scalar_lea.hbm %s6737_s2, %s4311_s8 }
 0x237   : > { %s3888_s7 = sshll.u32 %s167_s5, 4  ;;  %s3869_s9 = scalar_lea.sflag [#allocation3], %s6649_s29  ;;  %s6689_s7 = int_to_ptr.vmem [resolvable:$true] %s3888_s7 }
 0x238   : > { %3848 = vxpose.xlu1.b32.cont [15/16] (narrow) %v6631_v63, 8  ;;  %s5390_s10 = scalar_lea.vmem %s6689_s7, 256  ;;  %s5459_s19 = smov [#allocation2]  }
 0x239   : > { %p5391_p1 = scmp.ne.s32.totalorder %s6689_s7, %s5390_s10  ;;  %s5394_s16 = sshll.u32 %s5459_s19, 4  ;;  %s5395_s16 = int_to_ptr.vmem [resolvable:$false] %s5394_s16 }
 0x23a   : > { %s5396_s20 = scalar_lea.vmem %s5395_s16, 512  ;;  %p5397_p4 = scmp.lt.s32.totalorder %s6689_s7, %s5395_s16 }
 0x23b   : > { %p5392_p2 = pnand %p5391_p1, %p5518_p5  ;;  %p5398_p7 = scmp.lt.s32.totalorder %s5396_s20, %s5390_s10 }
 0x23c   : > { %3849 = vxpose.xlu1.b32.end [16/16] (narrow) %v6626_v61, 8 }
 0x23d   : > { %p5393_p3 = pneg %p5392_p2  ;;  %p5399_p8 = por %p5398_p7, %p5397_p4 }
 0x23f   : > { %p5400_p9 = pnand %p5399_p8, %p5393_p3 }
 0x257   : > { %v3818_v60 = vpop.trf.xlu0 }
 0x258   : > { %3866 = vst [vmem:[%s167_s5] sm:$0xff] %v3818_v60 }
 0x280   : > { %v3850_v0 = vpop.trf.xlu1 }
 0x281   : > { %3867 = vst [vmem:[%s167_s5 + $0x8] sm:$0xff] %v3850_v0 }
 0x282   : > { %5403 = shalt.err (!%p5400_p9)
}
 0x283   : > { %s5404_s29 = scalar_lea.hbm %s6694_s6, 256  ;;  %s5408_s26 = scalar_lea.hbm %s6737_s2, 512 }
 0x284   : > { %p5405_p10 = scmp.ne.s32.totalorder %s6694_s6, %s5404_s29  ;;  %p5409_p13 = scmp.lt.u32.totalorder %s6694_s6, %s6737_s2 }
 0x285   : > { %p5410_p0 = scmp.lt.u32.totalorder %s5408_s26, %s5404_s29  ;;  %p5412_p2 = scmp.lt.u32.totalorder %s5404_s29, %s6694_s6 }
 0x286   : > { %p5406_p11 = pnand %p5405_p10, %p5518_p5 }
 0x287   : > { %p5411_p1 = por %p5410_p0, %p5409_p13 }
 0x288   : > { %p5407_p12 = pneg %p5406_p11 }
 0x289   : > { %p5413_p3 = por %p5412_p2, %p5411_p1 }
 0x28b   : > { %p5414_p4 = pnand %p5413_p3, %p5407_p12 }
 0x28d   : > { %5417 = shalt.err (!%p5414_p4)
}
 0x28e   : > { %5318 = dma.vmem_to_hbm [thread:$0]  (%p5518_p5), %s6689_s7, 256, %s6694_s6, %s3869_s9  }
 0x28f PF: > { %p5329_p7 = scmp.ge.s32.totalorder %s5456_s15, 2  ;;  %s3913_s30 = sand.u32 1, %s5444_s12  }
 0x290   : > { %s3914_s4 = scalar_lea.sflag [#allocation3], %s3913_s30 }
 0x291   : > { %p5323_p8 = pnand %p5329_p7, %p5522_p6 }
 0x293   : > { %5435 = dma.done.wait (!%p5323_p8), %s3914_s4, 256  }
 0x294   : > { %5437 = vsyncadd (!%p5323_p8), %s3914_s4, 4294967040  ;;  %s3923_s5 = scalar_lea.sflag [#allocation5], %s3913_s30 }
 0x295   : > { %5439 = dma.done.wait (!%p5323_p8), %s3923_s5, 32  }
 0x296   : > { %5441 = vsyncadd (!%p5323_p8), %s3923_s5, 4294967264  ;;  %p17_p5 = scmp.ge.s32.totalorder %s5505_s18, 4   ;;  %s6850_s12 = smov %s5448_s13 }
 0x297   : > { %s6851_s13 = smov %s5452_s14  ;;  %s6852_s14 = smov %s5516_s21 }
 0x298   : > { %s6853_s15 = smov %s5505_s18  ;;  %19 = sbr.rel (!%p17_p5) target bundleno = 5 (0x5), region = 88 }
 0x29f   :  { %3928 = vsyncpa [#allocation3], 1 }
 0x2a0   :  { %3930 = vsyncpa [#allocation3 + $0x1], 1 }
 0x2a1   :  { %3931 = vsyncpa [#allocation5], 1 }
 0x2a2   :  { %3933 = vsyncpa [#allocation5 + $0x1], 1 }

</bundles_post_ra>
